<compile_context>
chip_gen: v6e
topology: v6e:2x2x1
jax: 0.10.0
libtpu: 0.0.40
codegen_flags: <defaults>
</compile_context>

<pallas_src>
import jax
import jax.numpy as jnp
from jax.experimental import pallas as pl
from jax.experimental.pallas import tpu as pltpu


# -----------------------------------------------------------------------------
# Model config
# -----------------------------------------------------------------------------
PATCH = 4           # patch size
EMBED = 32          # transformer width
HEADS = 4           # attention heads
HEAD_DIM = EMBED // HEADS
MLP_HIDDEN = 64
ENC_OUT = 1000      # ViT encoder output dim (ImageNet-style head), feeds fc
NUM_CLASSES = 3     # SupCEResNet default num_classes
OUT_PAD = 128       # lane-dense padded logits width (wrapper slices back to 3)
EPS = 1e-6          # TODO(synk): PyTorch nn.LayerNorm default is 1e-5; ViTs use 1e-6


# -----------------------------------------------------------------------------
# Fused Pallas kernel (one grid step == one batch element, everything in VMEM)
# -----------------------------------------------------------------------------
def _ln(x, g, b):
    mu = jnp.mean(x, axis=-1, keepdims=True)
    xc = x - mu
    var = jnp.mean(xc * xc, axis=-1, keepdims=True)
    return xc * jax.lax.rsqrt(var + EPS) * g + b


def _fused_kernel(xp_ref, cls_pos_ref, w_patch_ref, b_patch_ref,
                  ln1_g_ref, ln1_b_ref, w_qkv_ref, b_qkv_ref,
                  w_proj_ref, b_proj_ref, ln2_g_ref, ln2_b_ref,
                  w_fc1_ref, b_fc1_ref, w_fc2_ref, b_fc2_ref,
                  lnf_g_ref, lnf_b_ref, w_head_ref, b_head_ref,
                  fc_w_ref, fc_b_ref, out_ref):
    f32 = jnp.float32

    # --- patch embedding (row 0 of xp is zeros; CLS/pos are folded into cls_pos) ---
    xp = xp_ref[...].astype(f32)                                  # (seq, C*P*P)
    h = jnp.dot(xp, w_patch_ref[...], preferred_element_type=f32) + b_patch_ref[...]
    h = h + cls_pos_ref[...]                                      # (seq, EMBED)

    # --- attention sub-block ---
    x1 = _ln(h, ln1_g_ref[...], ln1_b_ref[...])
    qkv = jnp.dot(x1, w_qkv_ref[...], preferred_element_type=f32) + b_qkv_ref[...]
    q = qkv[:, :EMBED]
    k = qkv[:, EMBED:2 * EMBED]
    v = qkv[:, 2 * EMBED:]
    w_proj = w_proj_ref[...]
    scale = 1.0 / float(HEAD_DIM) ** 0.5

    proj = jnp.zeros_like(h)
    for hd in range(HEADS):                                       # static unroll (4)
        lo = hd * HEAD_DIM
        hi = lo + HEAD_DIM
        qh = q[:, lo:hi]
        kh = k[:, lo:hi]
        vh = v[:, lo:hi]
        s = jax.lax.dot_general(qh, kh, (((1,), (1,)), ((), ())),
                                preferred_element_type=f32) * scale   # (seq, seq)
        m = jnp.max(s, axis=-1, keepdims=True)
        p = jnp.exp(s - m)
        denom = jnp.sum(p, axis=-1, keepdims=True)
        p = p * pl.reciprocal(denom, approx=True)
        oh = jnp.dot(p, vh, preferred_element_type=f32)               # (seq, HEAD_DIM)
        # fold head output straight into the output projection (no concat needed)
        proj = proj + jnp.dot(oh, w_proj[lo:hi, :], preferred_element_type=f32)
    h = h + proj + b_proj_ref[...]

    # --- MLP sub-block ---
    x2 = _ln(h, ln2_g_ref[...], ln2_b_ref[...])
    m1 = jnp.dot(x2, w_fc1_ref[...], preferred_element_type=f32) + b_fc1_ref[...]
    # TODO(synk): PyTorch nn.GELU default is exact erf; tanh-approx used (EUP-friendly).
    m1 = jax.nn.gelu(m1, approximate=True)
    m2 = jnp.dot(m1, w_fc2_ref[...], preferred_element_type=f32) + b_fc2_ref[...]
    h = h + m2

    # --- final LN -> CLS token -> head (D->1000) -> fc (1000->num_classes, padded) ---
    hf = _ln(h, lnf_g_ref[...], lnf_b_ref[...])
    cls_tok = hf[0:1, :]                                           # (1, EMBED)
    feats = jnp.dot(cls_tok, w_head_ref[...], preferred_element_type=f32) + b_head_ref[...]
    logits = jnp.dot(feats, fc_w_ref[...], preferred_element_type=f32) + fc_b_ref[...]  # (1, OUT_PAD)

    # lane+sublane dense (8, 128) unmasked store; wrapper reads row 0.
    out_ref[...] = jnp.broadcast_to(logits, out_ref.shape).astype(out_ref.dtype)


# -----------------------------------------------------------------------------
# Parameters
# -----------------------------------------------------------------------------
def init_params(key, in_channels, img_size):
    n_patches = (img_size // PATCH) ** 2
    seq = n_patches + 1  # + CLS token
    patch_dim = in_channels * PATCH * PATCH

    keys = jax.random.split(key, 16)
    n = lambda k, shape, s=0.02: (s * jax.random.normal(k, shape)).astype(jnp.float32)
    z = lambda shape: jnp.zeros(shape, jnp.float32)
    o = lambda shape: jnp.ones(shape, jnp.float32)

    return {
        "w_patch": n(keys[0], (patch_dim, EMBED)), "b_patch": z((EMBED,)),
        "cls": n(keys[1], (1, 1, EMBED)),
        "pos": n(keys[2], (1, seq, EMBED)),
        "ln1_g": o((EMBED,)), "ln1_b": z((EMBED,)),
        "w_qkv": n(keys[3], (EMBED, 3 * EMBED)), "b_qkv": z((3 * EMBED,)),
        "w_proj": n(keys[4], (EMBED, EMBED)), "b_proj": z((EMBED,)),
        "ln2_g": o((EMBED,)), "ln2_b": z((EMBED,)),
        "w_fc1": n(keys[5], (EMBED, MLP_HIDDEN)), "b_fc1": z((MLP_HIDDEN,)),
        "w_fc2": n(keys[6], (MLP_HIDDEN, EMBED)), "b_fc2": z((EMBED,)),
        "lnf_g": o((EMBED,)), "lnf_b": z((EMBED,)),
        "w_head": n(keys[7], (EMBED, ENC_OUT)), "b_head": z((ENC_OUT,)),
        # SupCEResNet.fc = nn.Linear(1000, num_classes)
        "fc_w": n(keys[8], (ENC_OUT, NUM_CLASSES)), "fc_b": z((NUM_CLASSES,)),
    }


# -----------------------------------------------------------------------------
# Forward pass: fc(encoder(x)) in one fused pallas_call
# -----------------------------------------------------------------------------
def sup_ce_resnet_forward(x, p):
    """x: (B, C, H, W) NCHW -> (B, num_classes) logits."""
    B, C, H, W = x.shape
    gh, gw = H // PATCH, W // PATCH
    n_patches = gh * gw
    seq = n_patches + 1
    patch_dim = C * PATCH * PATCH

    # Layout glue (plain JAX, no compute): NCHW -> (B, n_patches, C*P*P) patch rows,
    # with a leading zero row per batch element standing in for the CLS slot.
    xp = x.reshape(B, C, gh, PATCH, gw, PATCH).transpose(0, 2, 4, 1, 3, 5)
    xp = xp.reshape(B, n_patches, patch_dim)
    xp_pad = jnp.concatenate(
        [jnp.zeros((B, 1, patch_dim), xp.dtype), xp], axis=1)      # (B, seq, patch_dim)

    # Fold CLS token into the positional table (row 0 of the zero patch embeds to
    # b_patch, which is cancelled here), so every sequence row is handled uniformly.
    pos = p["pos"][0]                                              # (seq, EMBED)
    cls_pos = pos.at[0].add(p["cls"][0, 0] - p["b_patch"])         # (seq, EMBED)

    # Pad the 3-wide classifier to a lane-dense 128-wide matmul/store.
    fc_w_pad = jnp.zeros((ENC_OUT, OUT_PAD), jnp.float32).at[:, :NUM_CLASSES].set(p["fc_w"])
    fc_b_pad = jnp.zeros((1, OUT_PAD), jnp.float32).at[0, :NUM_CLASSES].set(p["fc_b"])

    resident = [
        cls_pos,
        p["w_patch"], p["b_patch"].reshape(1, -1),
        p["ln1_g"].reshape(1, -1), p["ln1_b"].reshape(1, -1),
        p["w_qkv"], p["b_qkv"].reshape(1, -1),
        p["w_proj"], p["b_proj"].reshape(1, -1),
        p["ln2_g"].reshape(1, -1), p["ln2_b"].reshape(1, -1),
        p["w_fc1"], p["b_fc1"].reshape(1, -1),
        p["w_fc2"], p["b_fc2"].reshape(1, -1),
        p["lnf_g"].reshape(1, -1), p["lnf_b"].reshape(1, -1),
        p["w_head"], p["b_head"].reshape(1, -1),
        fc_w_pad, fc_b_pad,
    ]

    in_specs = [pl.BlockSpec((None, seq, patch_dim), lambda b: (b, 0, 0))]
    # Weights: constant block index across the grid -> DMA'd once, resident in VMEM.
    in_specs += [pl.BlockSpec(a.shape, lambda b: (0, 0)) for a in resident]

    out_pad = pl.pallas_call(
        _fused_kernel,
        out_shape=jax.ShapeDtypeStruct((B, 8, OUT_PAD), jnp.float32),
        grid=(B,),
        in_specs=in_specs,
        out_specs=pl.BlockSpec((None, 8, OUT_PAD), lambda b: (b, 0, 0)),
        compiler_params=pltpu.CompilerParams(
            dimension_semantics=("parallel",),   # v7x: shard batch rows across 2 TCs
        ),
    )(xp_pad, *resident)

    return out_pad[:, 0, :NUM_CLASSES]


# -----------------------------------------------------------------------------
if __name__ == "__main__":
    key = jax.random.PRNGKey(0)
    k_x, k_p = jax.random.split(key)

    B, C, H, W = 2, 3, 16, 16                 # small NCHW input
    x = jax.random.normal(k_x, (B, C, H, W), dtype=jnp.float32)
    params = init_params(k_p, C, H)

    logits = jax.jit(sup_ce_resnet_forward)(x, params)
    logits = jax.block_until_ready(logits)

    assert logits.shape == (B, NUM_CLASSES), logits.shape
    assert logits.dtype == jnp.float32
    assert bool(jnp.all(jnp.isfinite(logits)))
    print("KERNEL_OK")
</pallas_src>

<mosaic_0001>
module attributes {stable_mosaic.version = 11 : i64} {
  func.func @_fused_kernel(%arg0: i32, %arg1: memref<1x17x48xf32, #tpu.memory_space<vmem>>, %arg2: memref<17x32xf32, #tpu.memory_space<vmem>>, %arg3: memref<48x32xf32, #tpu.memory_space<vmem>>, %arg4: memref<1x32xf32, #tpu.memory_space<vmem>>, %arg5: memref<1x32xf32, #tpu.memory_space<vmem>>, %arg6: memref<1x32xf32, #tpu.memory_space<vmem>>, %arg7: memref<32x96xf32, #tpu.memory_space<vmem>>, %arg8: memref<1x96xf32, #tpu.memory_space<vmem>>, %arg9: memref<32x32xf32, #tpu.memory_space<vmem>>, %arg10: memref<1x32xf32, #tpu.memory_space<vmem>>, %arg11: memref<1x32xf32, #tpu.memory_space<vmem>>, %arg12: memref<1x32xf32, #tpu.memory_space<vmem>>, %arg13: memref<32x64xf32, #tpu.memory_space<vmem>>, %arg14: memref<1x64xf32, #tpu.memory_space<vmem>>, %arg15: memref<64x32xf32, #tpu.memory_space<vmem>>, %arg16: memref<1x32xf32, #tpu.memory_space<vmem>>, %arg17: memref<1x32xf32, #tpu.memory_space<vmem>>, %arg18: memref<1x32xf32, #tpu.memory_space<vmem>>, %arg19: memref<32x1000xf32, #tpu.memory_space<vmem>>, %arg20: memref<1x1000xf32, #tpu.memory_space<vmem>>, %arg21: memref<1000x128xf32, #tpu.memory_space<vmem>>, %arg22: memref<1x128xf32, #tpu.memory_space<vmem>>, %arg23: memref<1x8x128xf32, #tpu.memory_space<vmem>>) attributes {dimension_semantics = [#tpu.dimension_semantics<parallel>], iteration_bounds = array<i64: 2>, scalar_prefetch = 0 : i64, scratch_operands = 0 : i64, tpu.core_type = #tpu.core_type<tc>, window_params = [{transform_indices = @transform_0, window_bounds = array<i64: 1, 17, 48>}, {pipeline_mode = #tpu.pipeline_mode<synchronous>, transform_indices = @transform_1, window_bounds = array<i64: 17, 32>}, {pipeline_mode = #tpu.pipeline_mode<synchronous>, transform_indices = @transform_2, window_bounds = array<i64: 48, 32>}, {pipeline_mode = #tpu.pipeline_mode<synchronous>, transform_indices = @transform_3, window_bounds = array<i64: 1, 32>}, {pipeline_mode = #tpu.pipeline_mode<synchronous>, transform_indices = @transform_4, window_bounds = array<i64: 1, 32>}, {pipeline_mode = #tpu.pipeline_mode<synchronous>, transform_indices = @transform_5, window_bounds = array<i64: 1, 32>}, {pipeline_mode = #tpu.pipeline_mode<synchronous>, transform_indices = @transform_6, window_bounds = array<i64: 32, 96>}, {pipeline_mode = #tpu.pipeline_mode<synchronous>, transform_indices = @transform_7, window_bounds = array<i64: 1, 96>}, {pipeline_mode = #tpu.pipeline_mode<synchronous>, transform_indices = @transform_8, window_bounds = array<i64: 32, 32>}, {pipeline_mode = #tpu.pipeline_mode<synchronous>, transform_indices = @transform_9, window_bounds = array<i64: 1, 32>}, {pipeline_mode = #tpu.pipeline_mode<synchronous>, transform_indices = @transform_10, window_bounds = array<i64: 1, 32>}, {pipeline_mode = #tpu.pipeline_mode<synchronous>, transform_indices = @transform_11, window_bounds = array<i64: 1, 32>}, {pipeline_mode = #tpu.pipeline_mode<synchronous>, transform_indices = @transform_12, window_bounds = array<i64: 32, 64>}, {pipeline_mode = #tpu.pipeline_mode<synchronous>, transform_indices = @transform_13, window_bounds = array<i64: 1, 64>}, {pipeline_mode = #tpu.pipeline_mode<synchronous>, transform_indices = @transform_14, window_bounds = array<i64: 64, 32>}, {pipeline_mode = #tpu.pipeline_mode<synchronous>, transform_indices = @transform_15, window_bounds = array<i64: 1, 32>}, {pipeline_mode = #tpu.pipeline_mode<synchronous>, transform_indices = @transform_16, window_bounds = array<i64: 1, 32>}, {pipeline_mode = #tpu.pipeline_mode<synchronous>, transform_indices = @transform_17, window_bounds = array<i64: 1, 32>}, {pipeline_mode = #tpu.pipeline_mode<synchronous>, transform_indices = @transform_18, window_bounds = array<i64: 32, 1000>}, {pipeline_mode = #tpu.pipeline_mode<synchronous>, transform_indices = @transform_19, window_bounds = array<i64: 1, 1000>}, {pipeline_mode = #tpu.pipeline_mode<synchronous>, transform_indices = @transform_20, window_bounds = array<i64: 1000, 128>}, {pipeline_mode = #tpu.pipeline_mode<synchronous>, transform_indices = @transform_21, window_bounds = array<i64: 1, 128>}, {transform_indices = @transform_22, window_bounds = array<i64: 1, 8, 128>}]} {
    %c0 = arith.constant 0 : index
    %c0_0 = arith.constant 0 : index
    %c0_1 = arith.constant 0 : index
    %0 = vector.load %arg1[%c0, %c0_0, %c0_1] : memref<1x17x48xf32, #tpu.memory_space<vmem>>, vector<1x17x48xf32>
    %1 = vector.shape_cast %0 : vector<1x17x48xf32> to vector<17x48xf32>
    %c0_2 = arith.constant 0 : index
    %c0_3 = arith.constant 0 : index
    %2 = vector.load %arg3[%c0_2, %c0_3] : memref<48x32xf32, #tpu.memory_space<vmem>>, vector<48x32xf32>
    %cst = arith.constant dense<0.000000e+00> : vector<17x32xf32>
    %3 = tpu.matmul %1, %2, %cst {dimension_numbers = #tpu.dot_dimension_numbers<[1], [0], [0], [1], [0, 0, 1, 1], [], []>} : vector<17x48xf32>, vector<48x32xf32>, vector<17x32xf32> -> vector<17x32xf32>
    %c0_4 = arith.constant 0 : index
    %c0_5 = arith.constant 0 : index
    %4 = vector.load %arg4[%c0_4, %c0_5] : memref<1x32xf32, #tpu.memory_space<vmem>>, vector<1x32xf32>
    %5 = vector.broadcast %4 : vector<1x32xf32> to vector<17x32xf32>
    %6 = arith.addf %3, %5 : vector<17x32xf32>
    %c0_6 = arith.constant 0 : index
    %c0_7 = arith.constant 0 : index
    %7 = vector.load %arg2[%c0_6, %c0_7] : memref<17x32xf32, #tpu.memory_space<vmem>>, vector<17x32xf32>
    %8 = arith.addf %6, %7 : vector<17x32xf32>
    %c0_8 = arith.constant 0 : index
    %c0_9 = arith.constant 0 : index
    %9 = vector.load %arg5[%c0_8, %c0_9] : memref<1x32xf32, #tpu.memory_space<vmem>>, vector<1x32xf32>
    %c0_10 = arith.constant 0 : index
    %c0_11 = arith.constant 0 : index
    %10 = vector.load %arg6[%c0_10, %c0_11] : memref<1x32xf32, #tpu.memory_space<vmem>>, vector<1x32xf32>
    %cst_12 = arith.constant dense<0.000000e+00> : vector<17xf32>
    %11 = vector.multi_reduction <add>, %8, %cst_12 [1] : vector<17x32xf32> to vector<17xf32>
    %12 = vector.shape_cast %11 : vector<17xf32> to vector<17x1xf32>
    %cst_13 = arith.constant 3.200000e+01 : f32
    %13 = vector.broadcast %cst_13 : f32 to vector<17x1xf32>
    %14 = arith.divf %12, %13 : vector<17x1xf32>
    %15 = vector.broadcast %14 : vector<17x1xf32> to vector<17x32xf32>
    %16 = arith.subf %8, %15 : vector<17x32xf32>
    %17 = arith.mulf %16, %16 : vector<17x32xf32>
    %cst_14 = arith.constant dense<0.000000e+00> : vector<17xf32>
    %18 = vector.multi_reduction <add>, %17, %cst_14 [1] : vector<17x32xf32> to vector<17xf32>
    %19 = vector.shape_cast %18 : vector<17xf32> to vector<17x1xf32>
    %cst_15 = arith.constant 3.200000e+01 : f32
    %20 = vector.broadcast %cst_15 : f32 to vector<17x1xf32>
    %21 = arith.divf %19, %20 : vector<17x1xf32>
    %cst_16 = arith.constant 9.99999997E-7 : f32
    %22 = vector.broadcast %cst_16 : f32 to vector<17x1xf32>
    %23 = arith.addf %21, %22 : vector<17x1xf32>
    %24 = math.rsqrt %23 : vector<17x1xf32>
    %25 = vector.broadcast %24 : vector<17x1xf32> to vector<17x32xf32>
    %26 = arith.mulf %16, %25 : vector<17x32xf32>
    %27 = vector.broadcast %9 : vector<1x32xf32> to vector<17x32xf32>
    %28 = arith.mulf %26, %27 : vector<17x32xf32>
    %29 = vector.broadcast %10 : vector<1x32xf32> to vector<17x32xf32>
    %30 = arith.addf %28, %29 : vector<17x32xf32>
    %c0_17 = arith.constant 0 : index
    %c0_18 = arith.constant 0 : index
    %31 = vector.load %arg7[%c0_17, %c0_18] : memref<32x96xf32, #tpu.memory_space<vmem>>, vector<32x96xf32>
    %cst_19 = arith.constant dense<0.000000e+00> : vector<17x96xf32>
    %32 = tpu.matmul %30, %31, %cst_19 {dimension_numbers = #tpu.dot_dimension_numbers<[1], [0], [0], [1], [0, 0, 1, 1], [], []>} : vector<17x32xf32>, vector<32x96xf32>, vector<17x96xf32> -> vector<17x96xf32>
    %c0_20 = arith.constant 0 : index
    %c0_21 = arith.constant 0 : index
    %33 = vector.load %arg8[%c0_20, %c0_21] : memref<1x96xf32, #tpu.memory_space<vmem>>, vector<1x96xf32>
    %34 = vector.broadcast %33 : vector<1x96xf32> to vector<17x96xf32>
    %35 = arith.addf %32, %34 : vector<17x96xf32>
    %36 = vector.extract_strided_slice %35 {offsets = [0, 0], sizes = [17, 32], strides = [1, 1]} : vector<17x96xf32> to vector<17x32xf32>
    %37 = vector.extract_strided_slice %35 {offsets = [0, 32], sizes = [17, 32], strides = [1, 1]} : vector<17x96xf32> to vector<17x32xf32>
    %38 = vector.extract_strided_slice %35 {offsets = [0, 64], sizes = [17, 32], strides = [1, 1]} : vector<17x96xf32> to vector<17x32xf32>
    %c0_22 = arith.constant 0 : index
    %c0_23 = arith.constant 0 : index
    %39 = vector.load %arg9[%c0_22, %c0_23] : memref<32x32xf32, #tpu.memory_space<vmem>>, vector<32x32xf32>
    %cst_24 = arith.constant 0.000000e+00 : f32
    %40 = vector.broadcast %cst_24 : f32 to vector<17x32xf32>
    %41 = vector.extract_strided_slice %36 {offsets = [0, 0], sizes = [17, 8], strides = [1, 1]} : vector<17x32xf32> to vector<17x8xf32>
    %42 = vector.extract_strided_slice %37 {offsets = [0, 0], sizes = [17, 8], strides = [1, 1]} : vector<17x32xf32> to vector<17x8xf32>
    %43 = vector.extract_strided_slice %38 {offsets = [0, 0], sizes = [17, 8], strides = [1, 1]} : vector<17x32xf32> to vector<17x8xf32>
    %cst_25 = arith.constant dense<0.000000e+00> : vector<17x17xf32>
    %44 = tpu.matmul %41, %42, %cst_25 {dimension_numbers = #tpu.dot_dimension_numbers<[1], [1], [0], [0], [0, 0, 1, 0], [], []>} : vector<17x8xf32>, vector<17x8xf32>, vector<17x17xf32> -> vector<17x17xf32>
    %cst_26 = arith.constant 0.353553385 : f32
    %45 = vector.broadcast %cst_26 : f32 to vector<17x17xf32>
    %46 = arith.mulf %44, %45 : vector<17x17xf32>
    %cst_27 = arith.constant dense<0xFF800000> : vector<17xf32>
    %47 = vector.multi_reduction <maximumf>, %46, %cst_27 [1] : vector<17x17xf32> to vector<17xf32>
    %48 = vector.shape_cast %47 : vector<17xf32> to vector<17x1xf32>
    %49 = vector.broadcast %48 : vector<17x1xf32> to vector<17x17xf32>
    %50 = arith.subf %46, %49 : vector<17x17xf32>
    %51 = math.exp %50 : vector<17x17xf32>
    %cst_28 = arith.constant dense<0.000000e+00> : vector<17xf32>
    %52 = vector.multi_reduction <add>, %51, %cst_28 [1] : vector<17x17xf32> to vector<17xf32>
    %53 = vector.shape_cast %52 : vector<17xf32> to vector<17x1xf32>
    %54 = tpu.reciprocal %53 {approx = true} : vector<17x1xf32> -> vector<17x1xf32>
    %55 = vector.broadcast %54 : vector<17x1xf32> to vector<17x17xf32>
    %56 = arith.mulf %51, %55 : vector<17x17xf32>
    %cst_29 = arith.constant dense<0.000000e+00> : vector<17x8xf32>
    %57 = tpu.matmul %56, %43, %cst_29 {dimension_numbers = #tpu.dot_dimension_numbers<[1], [0], [0], [1], [0, 0, 1, 1], [], []>} : vector<17x17xf32>, vector<17x8xf32>, vector<17x8xf32> -> vector<17x8xf32>
    %58 = vector.extract_strided_slice %39 {offsets = [0, 0], sizes = [8, 32], strides = [1, 1]} : vector<32x32xf32> to vector<8x32xf32>
    %cst_30 = arith.constant dense<0.000000e+00> : vector<17x32xf32>
    %59 = tpu.matmul %57, %58, %cst_30 {dimension_numbers = #tpu.dot_dimension_numbers<[1], [0], [0], [1], [0, 0, 1, 1], [], []>} : vector<17x8xf32>, vector<8x32xf32>, vector<17x32xf32> -> vector<17x32xf32>
    %60 = arith.addf %40, %59 : vector<17x32xf32>
    %61 = vector.extract_strided_slice %36 {offsets = [0, 8], sizes = [17, 8], strides = [1, 1]} : vector<17x32xf32> to vector<17x8xf32>
    %62 = vector.extract_strided_slice %37 {offsets = [0, 8], sizes = [17, 8], strides = [1, 1]} : vector<17x32xf32> to vector<17x8xf32>
    %63 = vector.extract_strided_slice %38 {offsets = [0, 8], sizes = [17, 8], strides = [1, 1]} : vector<17x32xf32> to vector<17x8xf32>
    %cst_31 = arith.constant dense<0.000000e+00> : vector<17x17xf32>
    %64 = tpu.matmul %61, %62, %cst_31 {dimension_numbers = #tpu.dot_dimension_numbers<[1], [1], [0], [0], [0, 0, 1, 0], [], []>} : vector<17x8xf32>, vector<17x8xf32>, vector<17x17xf32> -> vector<17x17xf32>
    %cst_32 = arith.constant 0.353553385 : f32
    %65 = vector.broadcast %cst_32 : f32 to vector<17x17xf32>
    %66 = arith.mulf %64, %65 : vector<17x17xf32>
    %cst_33 = arith.constant dense<0xFF800000> : vector<17xf32>
    %67 = vector.multi_reduction <maximumf>, %66, %cst_33 [1] : vector<17x17xf32> to vector<17xf32>
    %68 = vector.shape_cast %67 : vector<17xf32> to vector<17x1xf32>
    %69 = vector.broadcast %68 : vector<17x1xf32> to vector<17x17xf32>
    %70 = arith.subf %66, %69 : vector<17x17xf32>
    %71 = math.exp %70 : vector<17x17xf32>
    %cst_34 = arith.constant dense<0.000000e+00> : vector<17xf32>
    %72 = vector.multi_reduction <add>, %71, %cst_34 [1] : vector<17x17xf32> to vector<17xf32>
    %73 = vector.shape_cast %72 : vector<17xf32> to vector<17x1xf32>
    %74 = tpu.reciprocal %73 {approx = true} : vector<17x1xf32> -> vector<17x1xf32>
    %75 = vector.broadcast %74 : vector<17x1xf32> to vector<17x17xf32>
    %76 = arith.mulf %71, %75 : vector<17x17xf32>
    %cst_35 = arith.constant dense<0.000000e+00> : vector<17x8xf32>
    %77 = tpu.matmul %76, %63, %cst_35 {dimension_numbers = #tpu.dot_dimension_numbers<[1], [0], [0], [1], [0, 0, 1, 1], [], []>} : vector<17x17xf32>, vector<17x8xf32>, vector<17x8xf32> -> vector<17x8xf32>
    %78 = vector.extract_strided_slice %39 {offsets = [8, 0], sizes = [8, 32], strides = [1, 1]} : vector<32x32xf32> to vector<8x32xf32>
    %cst_36 = arith.constant dense<0.000000e+00> : vector<17x32xf32>
    %79 = tpu.matmul %77, %78, %cst_36 {dimension_numbers = #tpu.dot_dimension_numbers<[1], [0], [0], [1], [0, 0, 1, 1], [], []>} : vector<17x8xf32>, vector<8x32xf32>, vector<17x32xf32> -> vector<17x32xf32>
    %80 = arith.addf %60, %79 : vector<17x32xf32>
    %81 = vector.extract_strided_slice %36 {offsets = [0, 16], sizes = [17, 8], strides = [1, 1]} : vector<17x32xf32> to vector<17x8xf32>
    %82 = vector.extract_strided_slice %37 {offsets = [0, 16], sizes = [17, 8], strides = [1, 1]} : vector<17x32xf32> to vector<17x8xf32>
    %83 = vector.extract_strided_slice %38 {offsets = [0, 16], sizes = [17, 8], strides = [1, 1]} : vector<17x32xf32> to vector<17x8xf32>
    %cst_37 = arith.constant dense<0.000000e+00> : vector<17x17xf32>
    %84 = tpu.matmul %81, %82, %cst_37 {dimension_numbers = #tpu.dot_dimension_numbers<[1], [1], [0], [0], [0, 0, 1, 0], [], []>} : vector<17x8xf32>, vector<17x8xf32>, vector<17x17xf32> -> vector<17x17xf32>
    %cst_38 = arith.constant 0.353553385 : f32
    %85 = vector.broadcast %cst_38 : f32 to vector<17x17xf32>
    %86 = arith.mulf %84, %85 : vector<17x17xf32>
    %cst_39 = arith.constant dense<0xFF800000> : vector<17xf32>
    %87 = vector.multi_reduction <maximumf>, %86, %cst_39 [1] : vector<17x17xf32> to vector<17xf32>
    %88 = vector.shape_cast %87 : vector<17xf32> to vector<17x1xf32>
    %89 = vector.broadcast %88 : vector<17x1xf32> to vector<17x17xf32>
    %90 = arith.subf %86, %89 : vector<17x17xf32>
    %91 = math.exp %90 : vector<17x17xf32>
    %cst_40 = arith.constant dense<0.000000e+00> : vector<17xf32>
    %92 = vector.multi_reduction <add>, %91, %cst_40 [1] : vector<17x17xf32> to vector<17xf32>
    %93 = vector.shape_cast %92 : vector<17xf32> to vector<17x1xf32>
    %94 = tpu.reciprocal %93 {approx = true} : vector<17x1xf32> -> vector<17x1xf32>
    %95 = vector.broadcast %94 : vector<17x1xf32> to vector<17x17xf32>
    %96 = arith.mulf %91, %95 : vector<17x17xf32>
    %cst_41 = arith.constant dense<0.000000e+00> : vector<17x8xf32>
    %97 = tpu.matmul %96, %83, %cst_41 {dimension_numbers = #tpu.dot_dimension_numbers<[1], [0], [0], [1], [0, 0, 1, 1], [], []>} : vector<17x17xf32>, vector<17x8xf32>, vector<17x8xf32> -> vector<17x8xf32>
    %98 = vector.extract_strided_slice %39 {offsets = [16, 0], sizes = [8, 32], strides = [1, 1]} : vector<32x32xf32> to vector<8x32xf32>
    %cst_42 = arith.constant dense<0.000000e+00> : vector<17x32xf32>
    %99 = tpu.matmul %97, %98, %cst_42 {dimension_numbers = #tpu.dot_dimension_numbers<[1], [0], [0], [1], [0, 0, 1, 1], [], []>} : vector<17x8xf32>, vector<8x32xf32>, vector<17x32xf32> -> vector<17x32xf32>
    %100 = arith.addf %80, %99 : vector<17x32xf32>
    %101 = vector.extract_strided_slice %36 {offsets = [0, 24], sizes = [17, 8], strides = [1, 1]} : vector<17x32xf32> to vector<17x8xf32>
    %102 = vector.extract_strided_slice %37 {offsets = [0, 24], sizes = [17, 8], strides = [1, 1]} : vector<17x32xf32> to vector<17x8xf32>
    %103 = vector.extract_strided_slice %38 {offsets = [0, 24], sizes = [17, 8], strides = [1, 1]} : vector<17x32xf32> to vector<17x8xf32>
    %cst_43 = arith.constant dense<0.000000e+00> : vector<17x17xf32>
    %104 = tpu.matmul %101, %102, %cst_43 {dimension_numbers = #tpu.dot_dimension_numbers<[1], [1], [0], [0], [0, 0, 1, 0], [], []>} : vector<17x8xf32>, vector<17x8xf32>, vector<17x17xf32> -> vector<17x17xf32>
    %cst_44 = arith.constant 0.353553385 : f32
    %105 = vector.broadcast %cst_44 : f32 to vector<17x17xf32>
    %106 = arith.mulf %104, %105 : vector<17x17xf32>
    %cst_45 = arith.constant dense<0xFF800000> : vector<17xf32>
    %107 = vector.multi_reduction <maximumf>, %106, %cst_45 [1] : vector<17x17xf32> to vector<17xf32>
    %108 = vector.shape_cast %107 : vector<17xf32> to vector<17x1xf32>
    %109 = vector.broadcast %108 : vector<17x1xf32> to vector<17x17xf32>
    %110 = arith.subf %106, %109 : vector<17x17xf32>
    %111 = math.exp %110 : vector<17x17xf32>
    %cst_46 = arith.constant dense<0.000000e+00> : vector<17xf32>
    %112 = vector.multi_reduction <add>, %111, %cst_46 [1] : vector<17x17xf32> to vector<17xf32>
    %113 = vector.shape_cast %112 : vector<17xf32> to vector<17x1xf32>
    %114 = tpu.reciprocal %113 {approx = true} : vector<17x1xf32> -> vector<17x1xf32>
    %115 = vector.broadcast %114 : vector<17x1xf32> to vector<17x17xf32>
    %116 = arith.mulf %111, %115 : vector<17x17xf32>
    %cst_47 = arith.constant dense<0.000000e+00> : vector<17x8xf32>
    %117 = tpu.matmul %116, %103, %cst_47 {dimension_numbers = #tpu.dot_dimension_numbers<[1], [0], [0], [1], [0, 0, 1, 1], [], []>} : vector<17x17xf32>, vector<17x8xf32>, vector<17x8xf32> -> vector<17x8xf32>
    %118 = vector.extract_strided_slice %39 {offsets = [24, 0], sizes = [8, 32], strides = [1, 1]} : vector<32x32xf32> to vector<8x32xf32>
    %cst_48 = arith.constant dense<0.000000e+00> : vector<17x32xf32>
    %119 = tpu.matmul %117, %118, %cst_48 {dimension_numbers = #tpu.dot_dimension_numbers<[1], [0], [0], [1], [0, 0, 1, 1], [], []>} : vector<17x8xf32>, vector<8x32xf32>, vector<17x32xf32> -> vector<17x32xf32>
    %120 = arith.addf %100, %119 : vector<17x32xf32>
    %121 = arith.addf %8, %120 : vector<17x32xf32>
    %c0_49 = arith.constant 0 : index
    %c0_50 = arith.constant 0 : index
    %122 = vector.load %arg10[%c0_49, %c0_50] : memref<1x32xf32, #tpu.memory_space<vmem>>, vector<1x32xf32>
    %123 = vector.broadcast %122 : vector<1x32xf32> to vector<17x32xf32>
    %124 = arith.addf %121, %123 : vector<17x32xf32>
    %c0_51 = arith.constant 0 : index
    %c0_52 = arith.constant 0 : index
    %125 = vector.load %arg11[%c0_51, %c0_52] : memref<1x32xf32, #tpu.memory_space<vmem>>, vector<1x32xf32>
    %c0_53 = arith.constant 0 : index
    %c0_54 = arith.constant 0 : index
    %126 = vector.load %arg12[%c0_53, %c0_54] : memref<1x32xf32, #tpu.memory_space<vmem>>, vector<1x32xf32>
    %cst_55 = arith.constant dense<0.000000e+00> : vector<17xf32>
    %127 = vector.multi_reduction <add>, %124, %cst_55 [1] : vector<17x32xf32> to vector<17xf32>
    %128 = vector.shape_cast %127 : vector<17xf32> to vector<17x1xf32>
    %cst_56 = arith.constant 3.200000e+01 : f32
    %129 = vector.broadcast %cst_56 : f32 to vector<17x1xf32>
    %130 = arith.divf %128, %129 : vector<17x1xf32>
    %131 = vector.broadcast %130 : vector<17x1xf32> to vector<17x32xf32>
    %132 = arith.subf %124, %131 : vector<17x32xf32>
    %133 = arith.mulf %132, %132 : vector<17x32xf32>
    %cst_57 = arith.constant dense<0.000000e+00> : vector<17xf32>
    %134 = vector.multi_reduction <add>, %133, %cst_57 [1] : vector<17x32xf32> to vector<17xf32>
    %135 = vector.shape_cast %134 : vector<17xf32> to vector<17x1xf32>
    %cst_58 = arith.constant 3.200000e+01 : f32
    %136 = vector.broadcast %cst_58 : f32 to vector<17x1xf32>
    %137 = arith.divf %135, %136 : vector<17x1xf32>
    %cst_59 = arith.constant 9.99999997E-7 : f32
    %138 = vector.broadcast %cst_59 : f32 to vector<17x1xf32>
    %139 = arith.addf %137, %138 : vector<17x1xf32>
    %140 = math.rsqrt %139 : vector<17x1xf32>
    %141 = vector.broadcast %140 : vector<17x1xf32> to vector<17x32xf32>
    %142 = arith.mulf %132, %141 : vector<17x32xf32>
    %143 = vector.broadcast %125 : vector<1x32xf32> to vector<17x32xf32>
    %144 = arith.mulf %142, %143 : vector<17x32xf32>
    %145 = vector.broadcast %126 : vector<1x32xf32> to vector<17x32xf32>
    %146 = arith.addf %144, %145 : vector<17x32xf32>
    %c0_60 = arith.constant 0 : index
    %c0_61 = arith.constant 0 : index
    %147 = vector.load %arg13[%c0_60, %c0_61] : memref<32x64xf32, #tpu.memory_space<vmem>>, vector<32x64xf32>
    %cst_62 = arith.constant dense<0.000000e+00> : vector<17x64xf32>
    %148 = tpu.matmul %146, %147, %cst_62 {dimension_numbers = #tpu.dot_dimension_numbers<[1], [0], [0], [1], [0, 0, 1, 1], [], []>} : vector<17x32xf32>, vector<32x64xf32>, vector<17x64xf32> -> vector<17x64xf32>
    %c0_63 = arith.constant 0 : index
    %c0_64 = arith.constant 0 : index
    %149 = vector.load %arg14[%c0_63, %c0_64] : memref<1x64xf32, #tpu.memory_space<vmem>>, vector<1x64xf32>
    %150 = vector.broadcast %149 : vector<1x64xf32> to vector<17x64xf32>
    %151 = arith.addf %148, %150 : vector<17x64xf32>
    %152 = arith.mulf %151, %151 : vector<17x64xf32>
    %153 = arith.mulf %151, %152 : vector<17x64xf32>
    %cst_65 = arith.constant 4.471500e-02 : f32
    %154 = vector.broadcast %cst_65 : f32 to vector<17x64xf32>
    %155 = arith.mulf %154, %153 : vector<17x64xf32>
    %156 = arith.addf %151, %155 : vector<17x64xf32>
    %cst_66 = arith.constant 0.797884583 : f32
    %157 = vector.broadcast %cst_66 : f32 to vector<17x64xf32>
    %158 = arith.mulf %157, %156 : vector<17x64xf32>
    %159 = math.tanh %158 : vector<17x64xf32>
    %cst_67 = arith.constant 1.000000e+00 : f32
    %160 = vector.broadcast %cst_67 : f32 to vector<17x64xf32>
    %161 = arith.addf %160, %159 : vector<17x64xf32>
    %cst_68 = arith.constant 5.000000e-01 : f32
    %162 = vector.broadcast %cst_68 : f32 to vector<17x64xf32>
    %163 = arith.mulf %162, %161 : vector<17x64xf32>
    %164 = arith.mulf %151, %163 : vector<17x64xf32>
    %c0_69 = arith.constant 0 : index
    %c0_70 = arith.constant 0 : index
    %165 = vector.load %arg15[%c0_69, %c0_70] : memref<64x32xf32, #tpu.memory_space<vmem>>, vector<64x32xf32>
    %cst_71 = arith.constant dense<0.000000e+00> : vector<17x32xf32>
    %166 = tpu.matmul %164, %165, %cst_71 {dimension_numbers = #tpu.dot_dimension_numbers<[1], [0], [0], [1], [0, 0, 1, 1], [], []>} : vector<17x64xf32>, vector<64x32xf32>, vector<17x32xf32> -> vector<17x32xf32>
    %c0_72 = arith.constant 0 : index
    %c0_73 = arith.constant 0 : index
    %167 = vector.load %arg16[%c0_72, %c0_73] : memref<1x32xf32, #tpu.memory_space<vmem>>, vector<1x32xf32>
    %168 = vector.broadcast %167 : vector<1x32xf32> to vector<17x32xf32>
    %169 = arith.addf %166, %168 : vector<17x32xf32>
    %170 = arith.addf %124, %169 : vector<17x32xf32>
    %c0_74 = arith.constant 0 : index
    %c0_75 = arith.constant 0 : index
    %171 = vector.load %arg17[%c0_74, %c0_75] : memref<1x32xf32, #tpu.memory_space<vmem>>, vector<1x32xf32>
    %c0_76 = arith.constant 0 : index
    %c0_77 = arith.constant 0 : index
    %172 = vector.load %arg18[%c0_76, %c0_77] : memref<1x32xf32, #tpu.memory_space<vmem>>, vector<1x32xf32>
    %cst_78 = arith.constant dense<0.000000e+00> : vector<17xf32>
    %173 = vector.multi_reduction <add>, %170, %cst_78 [1] : vector<17x32xf32> to vector<17xf32>
    %174 = vector.shape_cast %173 : vector<17xf32> to vector<17x1xf32>
    %cst_79 = arith.constant 3.200000e+01 : f32
    %175 = vector.broadcast %cst_79 : f32 to vector<17x1xf32>
    %176 = arith.divf %174, %175 : vector<17x1xf32>
    %177 = vector.broadcast %176 : vector<17x1xf32> to vector<17x32xf32>
    %178 = arith.subf %170, %177 : vector<17x32xf32>
    %179 = arith.mulf %178, %178 : vector<17x32xf32>
    %cst_80 = arith.constant dense<0.000000e+00> : vector<17xf32>
    %180 = vector.multi_reduction <add>, %179, %cst_80 [1] : vector<17x32xf32> to vector<17xf32>
    %181 = vector.shape_cast %180 : vector<17xf32> to vector<17x1xf32>
    %cst_81 = arith.constant 3.200000e+01 : f32
    %182 = vector.broadcast %cst_81 : f32 to vector<17x1xf32>
    %183 = arith.divf %181, %182 : vector<17x1xf32>
    %cst_82 = arith.constant 9.99999997E-7 : f32
    %184 = vector.broadcast %cst_82 : f32 to vector<17x1xf32>
    %185 = arith.addf %183, %184 : vector<17x1xf32>
    %186 = math.rsqrt %185 : vector<17x1xf32>
    %187 = vector.broadcast %186 : vector<17x1xf32> to vector<17x32xf32>
    %188 = arith.mulf %178, %187 : vector<17x32xf32>
    %189 = vector.broadcast %171 : vector<1x32xf32> to vector<17x32xf32>
    %190 = arith.mulf %188, %189 : vector<17x32xf32>
    %191 = vector.broadcast %172 : vector<1x32xf32> to vector<17x32xf32>
    %192 = arith.addf %190, %191 : vector<17x32xf32>
    %193 = vector.extract_strided_slice %192 {offsets = [0, 0], sizes = [1, 32], strides = [1, 1]} : vector<17x32xf32> to vector<1x32xf32>
    %c0_83 = arith.constant 0 : index
    %c0_84 = arith.constant 0 : index
    %194 = vector.load %arg19[%c0_83, %c0_84] : memref<32x1000xf32, #tpu.memory_space<vmem>>, vector<32x1000xf32>
    %cst_85 = arith.constant dense<0.000000e+00> : vector<1x1000xf32>
    %195 = tpu.matmul %193, %194, %cst_85 {dimension_numbers = #tpu.dot_dimension_numbers<[1], [0], [0], [1], [0, 0, 1, 1], [], []>} : vector<1x32xf32>, vector<32x1000xf32>, vector<1x1000xf32> -> vector<1x1000xf32>
    %c0_86 = arith.constant 0 : index
    %c0_87 = arith.constant 0 : index
    %196 = vector.load %arg20[%c0_86, %c0_87] : memref<1x1000xf32, #tpu.memory_space<vmem>>, vector<1x1000xf32>
    %197 = arith.addf %195, %196 : vector<1x1000xf32>
    %c0_88 = arith.constant 0 : index
    %c0_89 = arith.constant 0 : index
    %198 = vector.load %arg21[%c0_88, %c0_89] : memref<1000x128xf32, #tpu.memory_space<vmem>>, vector<1000x128xf32>
    %cst_90 = arith.constant dense<0.000000e+00> : vector<1x128xf32>
    %199 = tpu.matmul %197, %198, %cst_90 {dimension_numbers = #tpu.dot_dimension_numbers<[1], [0], [0], [1], [0, 0, 1, 1], [], []>} : vector<1x1000xf32>, vector<1000x128xf32>, vector<1x128xf32> -> vector<1x128xf32>
    %c0_91 = arith.constant 0 : index
    %c0_92 = arith.constant 0 : index
    %200 = vector.load %arg22[%c0_91, %c0_92] : memref<1x128xf32, #tpu.memory_space<vmem>>, vector<1x128xf32>
    %201 = arith.addf %199, %200 : vector<1x128xf32>
    %202 = vector.shape_cast %201 : vector<1x128xf32> to vector<1x128xf32>
    %203 = vector.broadcast %202 : vector<1x128xf32> to vector<8x128xf32>
    %c0_93 = arith.constant 0 : index
    %c0_94 = arith.constant 0 : index
    %c0_95 = arith.constant 0 : index
    %204 = vector.load %arg23[%c0_93, %c0_94, %c0_95] : memref<1x8x128xf32, #tpu.memory_space<vmem>>, vector<1x8x128xf32>
    %205 = vector.shape_cast %204 : vector<1x8x128xf32> to vector<8x128xf32>
    %206 = vector.shape_cast %203 : vector<8x128xf32> to vector<1x8x128xf32>
    tpu.vector_store %arg23[%c0_93, %c0_94, %c0_95], %206 {strides = array<i32>} : memref<1x8x128xf32, #tpu.memory_space<vmem>>, vector<1x8x128xf32>,
    return
  }
  func.func @transform_0(%arg0: i32) -> (i32, i32, i32) {
    %c0_i32 = arith.constant 0 : i32
    %c0_i32_0 = arith.constant 0 : i32
    %c0_i32_1 = arith.constant 0 : i32
    return %arg0, %c0_i32, %c0_i32_0 : i32, i32, i32
  }
  func.func @transform_1(%arg0: i32) -> (i32, i32) {
    %c0_i32 = arith.constant 0 : i32
    %c0_i32_0 = arith.constant 0 : i32
    %c0_i32_1 = arith.constant 0 : i32
    return %c0_i32, %c0_i32_0 : i32, i32
  }
  func.func @transform_2(%arg0: i32) -> (i32, i32) {
    %c0_i32 = arith.constant 0 : i32
    %c0_i32_0 = arith.constant 0 : i32
    %c0_i32_1 = arith.constant 0 : i32
    return %c0_i32, %c0_i32_0 : i32, i32
  }
  func.func @transform_3(%arg0: i32) -> (i32, i32) {
    %c0_i32 = arith.constant 0 : i32
    %c0_i32_0 = arith.constant 0 : i32
    %c0_i32_1 = arith.constant 0 : i32
    return %c0_i32, %c0_i32_0 : i32, i32
  }
  func.func @transform_4(%arg0: i32) -> (i32, i32) {
    %c0_i32 = arith.constant 0 : i32
    %c0_i32_0 = arith.constant 0 : i32
    %c0_i32_1 = arith.constant 0 : i32
    return %c0_i32, %c0_i32_0 : i32, i32
  }
  func.func @transform_5(%arg0: i32) -> (i32, i32) {
    %c0_i32 = arith.constant 0 : i32
    %c0_i32_0 = arith.constant 0 : i32
    %c0_i32_1 = arith.constant 0 : i32
    return %c0_i32, %c0_i32_0 : i32, i32
  }
  func.func @transform_6(%arg0: i32) -> (i32, i32) {
    %c0_i32 = arith.constant 0 : i32
    %c0_i32_0 = arith.constant 0 : i32
    %c0_i32_1 = arith.constant 0 : i32
    return %c0_i32, %c0_i32_0 : i32, i32
  }
  func.func @transform_7(%arg0: i32) -> (i32, i32) {
    %c0_i32 = arith.constant 0 : i32
    %c0_i32_0 = arith.constant 0 : i32
    %c0_i32_1 = arith.constant 0 : i32
    return %c0_i32, %c0_i32_0 : i32, i32
  }
  func.func @transform_8(%arg0: i32) -> (i32, i32) {
    %c0_i32 = arith.constant 0 : i32
    %c0_i32_0 = arith.constant 0 : i32
    %c0_i32_1 = arith.constant 0 : i32
    return %c0_i32, %c0_i32_0 : i32, i32
  }
  func.func @transform_9(%arg0: i32) -> (i32, i32) {
    %c0_i32 = arith.constant 0 : i32
    %c0_i32_0 = arith.constant 0 : i32
    %c0_i32_1 = arith.constant 0 : i32
    return %c0_i32, %c0_i32_0 : i32, i32
  }
  func.func @transform_10(%arg0: i32) -> (i32, i32) {
    %c0_i32 = arith.constant 0 : i32
    %c0_i32_0 = arith.constant 0 : i32
    %c0_i32_1 = arith.constant 0 : i32
    return %c0_i32, %c0_i32_0 : i32, i32
  }
  func.func @transform_11(%arg0: i32) -> (i32, i32) {
    %c0_i32 = arith.constant 0 : i32
    %c0_i32_0 = arith.constant 0 : i32
    %c0_i32_1 = arith.constant 0 : i32
    return %c0_i32, %c0_i32_0 : i32, i32
  }
  func.func @transform_12(%arg0: i32) -> (i32, i32) {
    %c0_i32 = arith.constant 0 : i32
    %c0_i32_0 = arith.constant 0 : i32
    %c0_i32_1 = arith.constant 0 : i32
    return %c0_i32, %c0_i32_0 : i32, i32
  }
  func.func @transform_13(%arg0: i32) -> (i32, i32) {
    %c0_i32 = arith.constant 0 : i32
    %c0_i32_0 = arith.constant 0 : i32
    %c0_i32_1 = arith.constant 0 : i32
    return %c0_i32, %c0_i32_0 : i32, i32
  }
  func.func @transform_14(%arg0: i32) -> (i32, i32) {
    %c0_i32 = arith.constant 0 : i32
    %c0_i32_0 = arith.constant 0 : i32
    %c0_i32_1 = arith.constant 0 : i32
    return %c0_i32, %c0_i32_0 : i32, i32
  }
  func.func @transform_15(%arg0: i32) -> (i32, i32) {
    %c0_i32 = arith.constant 0 : i32
    %c0_i32_0 = arith.constant 0 : i32
    %c0_i32_1 = arith.constant 0 : i32
    return %c0_i32, %c0_i32_0 : i32, i32
  }
  func.func @transform_16(%arg0: i32) -> (i32, i32) {
    %c0_i32 = arith.constant 0 : i32
    %c0_i32_0 = arith.constant 0 : i32
    %c0_i32_1 = arith.constant 0 : i32
    return %c0_i32, %c0_i32_0 : i32, i32
  }
  func.func @transform_17(%arg0: i32) -> (i32, i32) {
    %c0_i32 = arith.constant 0 : i32
    %c0_i32_0 = arith.constant 0 : i32
    %c0_i32_1 = arith.constant 0 : i32
    return %c0_i32, %c0_i32_0 : i32, i32
  }
  func.func @transform_18(%arg0: i32) -> (i32, i32) {
    %c0_i32 = arith.constant 0 : i32
    %c0_i32_0 = arith.constant 0 : i32
    %c0_i32_1 = arith.constant 0 : i32
    return %c0_i32, %c0_i32_0 : i32, i32
  }
  func.func @transform_19(%arg0: i32) -> (i32, i32) {
    %c0_i32 = arith.constant 0 : i32
    %c0_i32_0 = arith.constant 0 : i32
    %c0_i32_1 = arith.constant 0 : i32
    return %c0_i32, %c0_i32_0 : i32, i32
  }
  func.func @transform_20(%arg0: i32) -> (i32, i32) {
    %c0_i32 = arith.constant 0 : i32
    %c0_i32_0 = arith.constant 0 : i32
    %c0_i32_1 = arith.constant 0 : i32
    return %c0_i32, %c0_i32_0 : i32, i32
  }
  func.func @transform_21(%arg0: i32) -> (i32, i32) {
    %c0_i32 = arith.constant 0 : i32
    %c0_i32_0 = arith.constant 0 : i32
    %c0_i32_1 = arith.constant 0 : i32
    return %c0_i32, %c0_i32_0 : i32, i32
  }
  func.func @transform_22(%arg0: i32) -> (i32, i32, i32) {
    %c0_i32 = arith.constant 0 : i32
    %c0_i32_0 = arith.constant 0 : i32
    %c0_i32_1 = arith.constant 0 : i32
    return %arg0, %c0_i32, %c0_i32_0 : i32, i32, i32
  }
}

</mosaic_0001>

<bundles_post_ra>
// kernel: sup_ce_resnet_forward.1
= control target key start
LH: loop header
LB: loop body
LE: loop exit
PB: predicated region body
PF: predicated region fallthrough
CT: control target
= control target key end

     0   :  { %s5231_s0 = inlined_call_operand.vmem [shape: f32[2,17,48], index: 0, kind: input, shape index: {}]   ;;  %s5232_s1 = inlined_call_operand.vmem [shape: f32[17,32], index: 1, kind: input, shape index: {}]   ;;  %s5233_s2 = inlined_call_operand.vmem [shape: f32[48,32], index: 2, kind: input, shape index: {}]   ;;  %s5234_s3 = inlined_call_operand.vmem [shape: f32[1,32], index: 3, kind: input, shape index: {}]   ;;  %s5235_s4 = inlined_call_operand.vmem [shape: f32[1,32], index: 4, kind: input, shape index: {}]   ;;  %s5236_s5 = inlined_call_operand.vmem [shape: f32[1,32], index: 5, kind: input, shape index: {}]   ;;  %s5237_s6 = inlined_call_operand.vmem [shape: f32[32,96], index: 6, kind: input, shape index: {}]   ;;  %s5238_s7 = inlined_call_operand.vmem [shape: f32[1,96], index: 7, kind: input, shape index: {}]   ;;  %s5239_s8 = inlined_call_operand.vmem [shape: f32[32,32], index: 8, kind: input, shape index: {}]   ;;  %s5240_s9 = inlined_call_operand.vmem [shape: f32[1,32], index: 9, kind: input, shape index: {}]   ;;  %s5241_s10 = inlined_call_operand.vmem [shape: f32[1,32], index: 10, kind: input, shape index: {}]   ;;  %s5242_s11 = inlined_call_operand.vmem [shape: f32[1,32], index: 11, kind: input, shape index: {}]   ;;  %s5243_s12 = inlined_call_operand.vmem [shape: f32[32,64], index: 12, kind: input, shape index: {}]   ;;  %s5244_s13 = inlined_call_operand.vmem [shape: f32[1,64], index: 13, kind: input, shape index: {}]   ;;  %s5245_s14 = inlined_call_operand.vmem [shape: f32[64,32], index: 14, kind: input, shape index: {}]   ;;  %s5246_s15 = inlined_call_operand.vmem [shape: f32[1,32], index: 15, kind: input, shape index: {}]   ;;  %s5247_s16 = inlined_call_operand.vmem [shape: f32[1,32], index: 16, kind: input, shape index: {}]   ;;  %s5248_s17 = inlined_call_operand.vmem [shape: f32[1,32], index: 17, kind: input, shape index: {}]   ;;  %s5249_s18 = inlined_call_operand.vmem [shape: f32[32,1000], index: 18, kind: input, shape index: {}]   ;;  %s5250_s19 = inlined_call_operand.vmem [shape: f32[1,1000], index: 19, kind: input, shape index: {}]   ;;  %s5251_s20 = inlined_call_operand.vmem [shape: f32[1000,128], index: 20, kind: input, shape index: {}]   ;;  %s5252_s21 = inlined_call_operand.vmem [shape: f32[1,128], index: 21, kind: input, shape index: {}]   ;;  %s5253_s22 = inlined_call_operand.vmem [shape: f32[2,8,128], index: 22, kind: output, shape index: {}]  }
   0x1   :  { %5257 = sst [smem:[#allocation2_spill]] %s5231_s0 }
   0x2   :  { %5258 = sst [smem:[#allocation3_spill]] %s5232_s1 }
   0x3   :  { %5259 = sst [smem:[#allocation4_spill]] %s5233_s2 }
   0x4   :  { %5260 = sst [smem:[#allocation5_spill]] %s5234_s3  ;;  %s4202_s3 = smov 0  }
   0x5   :  { %5261 = sst [smem:[#allocation6_spill]] %s5235_s4 }
   0x6   :  { %5262 = sst [smem:[#allocation7_spill]] %s5236_s5 }
   0x7   :  { %5263 = sst [smem:[#allocation8_spill]] %s5237_s6 }
   0x8 LB: > { %s3440_s28 = sadd.s32 4294967295, %s4072_s3   ;;  %p3444_p0 = scmp.ge.s32.totalorder %s4072_s3, 1  ;;  %s4072_s3 = sphi %s4202_s3, %s32_s3  }
   0x9   : > { %p612_p1 = scmp.lt.s32.totalorder %s4072_s3, 3 }
   0xb   : > { %p613_p2 = pnand %p3444_p0, %p612_p1 }
   0xc   : > { %s5264_s4 = sld [smem:[#allocation4_spill]] (!%p613_p2)  ;;  %p673_p3 = scmp.lt.s32.totalorder (!%p613_p2), %s3440_s28, 1 }
   0xd   : > { %616 = sbr.rel (%p613_p2) target bundleno = 4545 (0x11c1), region = 108  ;;  %s5265_s30 = sld [smem:[#allocation2_spill]] (!%p613_p2) }
   0xe   : > { %s5266_s6 = sld [smem:[#allocation5_spill]] (!%p613_p2)  ;;  %s4076_s27 = smov (!%p613_p2), 96  }
   0xf   : > { %s5267_s2 = sld [smem:[#allocation3_spill]] (!%p613_p2)  ;;  %s4077_s29 = smov (!%p613_p2), 88  }
  0x10   : > { %s5268_s5 = sld [smem:[#allocation8_spill]] (!%p613_p2)  ;;  %s4081_s1 = smov (!%p613_p2), 80  }
  0x11   : > { %s5269_s23 = sld [smem:[#allocation6_spill]] (!%p613_p2) }
  0x12   : > { %v690_v0 = vld [vmem:[%s5264_s4 + $0x28] sm:$0xff]  ;;  %v4074_v1 = vmov 0.0   ;;  %v689_v2 = vld [vmem:[%s5264_s4 + $0x20] sm:$0xff]  ;;  %vm4075_vm0 = vmmov 0   ;;  %s5272_s28 = smov (!%p673_p3, %s3440_s28), 1  ;;  %v688_v3 = vld [vmem:[%s5264_s4 + $0x18] sm:$0xff] }
  0x13   : > { %3732 = vmatprep.subr.mxu1 %v4074_v1  ;;  %3744 = vmatprep.mubr.msk.f32.mxu1 %vm4075_vm0, %v4074_v1  ;;  %s3976_s24 = smul.u32 24, %s5272_s28  ;;  %v687_v4 = vld [vmem:[%s5264_s4 + $0x10] sm:$0xff]  ;;  %v686_v5 = vld [vmem:[%s5264_s4 + $0x8] sm:$0xff]  ;;  %v685_v6 = vld [vmem:[%s5264_s4] sm:$0xff]  ;;  %vm698_vm1 = vcmask 392192   ;;  %vm796_vm2 = vcmask 261120  }
  0x14   : > { %3733 = vmatpush3.msra.mxu1 %v690_v0  ;;  %3785 = vmatprep.subr.mxu0 %v4074_v1  ;;  %v3447_v10 = vld [vmem:[%s5266_s6] ss:$0 sm:$0xff]  ;;  %vm803_vm3 = vcmask 253952   ;;  %s5270_s6 = sld [smem:[#allocation7_spill]]  ;;  %vm969_vm4 = vcmask 64512   ;;  %vm1065_vm5 = vcmask 138240  }
  0x15   : > { %3734 = vmatprep.subr.mxu1 %v4074_v1  ;;  %3791 = vmatprep.mubr.msk.f32.mxu0 %vm4075_vm0, %v4074_v1  ;;  %s677_s0 = scalar_lea.vmem %s5265_s30, %s3976_s24  ;;  %v788_v12 = vld [vmem:[%s5267_s2] sm:$0xff]  ;;  %v789_v17 = vld [vmem:[%s5267_s2 + $0x8] sm:$0xff]  ;;  %v790_v23 = vld [vmem:[%s5267_s2 + $0x10] sm:$0x1]  ;;  %s4078_s30 = smov 120   ;;  %vm1072_vm6 = vcmask 131072  }
  0x16   : > { %3735 = vmatpush3.msra.mxu1 %v689_v2  ;;  %v682_v7 = vld [vmem:[%s677_s0] sm:$0xff]  ;;  %v683_v8 = vld [vmem:[%s677_s0 + $0x8] sm:$0xff]  ;;  %v684_v9 = vld [vmem:[%s677_s0 + $0x10] sm:$0x1]  ;;  %s4079_s0 = smov 64   ;;  %vm1117_vm7 = vcmask 1040384  }
  0x17   : > { %3736 = vmatprep.subr.mxu1 %v4074_v1  ;;  %v859_v44 = vld [vmem:[%s5268_s5 + $0x18] sm:$0xff]  ;;  %v858_v45 = vld [vmem:[%s5268_s5 + $0x10] sm:$0xff]  ;;  %v857_v46 = vld [vmem:[%s5268_s5 + $0x8] sm:$0xff]  ;;  %s4082_s24 = smov 112   ;;  %vm2493_vm8 = vcmask 523264   ;;  %vm3098_vm9 = vcmask 850944  }
  0x18   : > { %3737 = vmatpush3.msra.mxu1 %v688_v3  ;;  %v856_v47 = vld [vmem:[%s5268_s5] sm:$0xff] }
  0x19   : > { %3738 = vmatprep.subr.mxu1 %v4074_v1  ;;  %v3451_v58 = vld [vmem:[%s5269_s23] ss:$0 sm:$0xff]  ;;  %s4080_s23 = smov 56  }
  0x1a   : > { %3739 = vmatpush3.msra.mxu1 %v687_v4  ;;  %v3452_v60 = vld [vmem:[%s5270_s6] ss:$0 sm:$0xff] }
  0x1b   : > { %3740 = vmatprep.subr.mxu1 %v4074_v1 }
  0x1c   : > { %3741 = vmatpush3.msra.mxu1 %v686_v5 }
  0x1d   : > { %3742 = vmatprep.subr.mxu1 %v4074_v1 }
  0x1e   : > { %3743 = vmatpush3.msra.mxu1 %v685_v6 }
  0x1f   : > { %3745 = vmatmul.mubr.msk.f32.vlgmr.msra.gmra.mxu1 %vm698_vm1, %v682_v7  ;;  %3753 = vmatprep.subr.mxu1 %v4074_v1 }
  0x20   : > { %3747 = vmatprep.mubr.msk.f32.mxu1 %vm4075_vm0, %v4074_v1  ;;  %3754 = vmatpush3.msra.mxu1 %v859_v44 }
  0x21   : > { %3755 = vmatprep.subr.mxu1 %v4074_v1 }
  0x22   : > { %3756 = vmatpush3.msra.mxu1 %v858_v45 }
  0x23   : > { %3748 = vmatmul.mubr.msk.f32.gmra.mxu1 %vm698_vm1, %v683_v8  ;;  %3757 = vmatprep.subr.mxu1 %v4074_v1 }
  0x24   : > { %3750 = vmatprep.mubr.msk.f32.mxu1 %vm4075_vm0, %v4074_v1  ;;  %3758 = vmatpush3.msra.mxu1 %v857_v46 }
  0x25   : > { %3759 = vmatprep.subr.mxu1 %v4074_v1 }
  0x26   : > { %3760 = vmatpush3.msra.mxu1 %v856_v47 }
  0x27   : > { %3751 = vmatmul.mubr.msk.f32.gmra.mxu1 %vm698_vm1, %v684_v9  ;;  %3770 = vmatprep.subr.mxu1 %v4074_v1 }
  0x28   : > { %3761 = vmatprep.mubr.msk.f32.mxu1 %vm4075_vm0, %v4074_v1 }
  0xdf   : > { %v774_v11 = vpop.f32.mrf.mxu1 }
  0xe0   : > { %v775_v13 = vadd.f32 %v3447_v10, %v774_v11 }
  0xe1   : > { %v3746_v14 = vpop.f32.mrf.mxu1 }
  0xe2   : > { %v4258_v15 = vadd.f32 %v788_v12, %v775_v13 }
  0xe3   : > { %v779_v16 = vpop.f32.mrf.mxu1 }
  0xe4   : > { %v780_v18 = vadd.f32 %v3447_v10, %v779_v16  ;;  %v797_v19 = vsel %vm796_vm2, %v4258_v15, 0.0 }
  0xe5   : > { %798 = vadd.xlane.f32.xlu0 %v797_v19  ;;  %v3749_v20 = vpop.f32.mrf.mxu1 }
  0xe6   : > { %v4265_v21 = vadd.f32 %v789_v17, %v780_v18 }
  0xe7   : > { %v784_v22 = vpop.f32.mrf.mxu1 }
  0xe8   : > { %v785_v24 = vadd.f32 %v3447_v10, %v784_v22  ;;  %v800_v25 = vsel %vm796_vm2, %v4265_v21, 0.0  ;;  %v3453_v10 = vld [vmem:[%s5238_s7] ss:$0 sm:$0xff] }
  0xe9   : > { %801 = vadd.xlane.f32.xlu0 %v800_v25  ;;  %v3752_v26 = vpop.f32.mrf.mxu1 }
  0xea   : > { %v4272_v27 = vadd.f32 %v790_v23, %v785_v24 }
  0xec   : > { %v804_v28 = vsel %vm803_vm3, %v4272_v27, 0.0 }
  0xed   : > { %805 = vadd.xlane.f32.xlu1 %v804_v28 }
 0x16e   : > { %v799_v29 = vpop.xlane.xlu0 %798 }
 0x16f   : > { %v808_v30 = vmul.f32 0.03125, %v799_v29 }
 0x171   : > { %v811_v31 = vsub.f32 %v4258_v15, %v808_v30 }
 0x172   : > { %v802_v32 = vpop.xlane.xlu0 %801 }
 0x173   : > { %v809_v33 = vmul.f32 0.03125, %v802_v32  ;;  %v814_v34 = vmul.f32 %v811_v31, %v811_v31 }
 0x175   : > { %v812_v35 = vsub.f32 %v4265_v21, %v809_v33  ;;  %v817_v36 = vsel %vm796_vm2, %v814_v34, 0.0 }
 0x176   : > { %818 = vadd.xlane.f32.xlu1 %v817_v36  ;;  %v806_v37 = vpop.xlane.xlu1 %805 }
 0x177   : > { %v810_v38 = vmul.f32 0.03125, %v806_v37  ;;  %v815_v39 = vmul.f32 %v812_v35, %v812_v35 }
 0x179   : > { %v813_v40 = vsub.f32 %v4272_v27, %v810_v38  ;;  %v820_v41 = vsel %vm796_vm2, %v815_v39, 0.0 }
 0x17a   : > { %821 = vadd.xlane.f32.xlu0 %v820_v41 }
 0x17b   : > { %v816_v42 = vmul.f32 %v813_v40, %v813_v40 }
 0x17d   : > { %v823_v43 = vsel %vm803_vm3, %v816_v42, 0.0 }
 0x17e   : > { %824 = vadd.xlane.f32.xlu1 %v823_v43 }
 0x1ff   : > { %v819_v48 = vpop.xlane.xlu1 %818 }
 0x200   : > { %v826_v49 = vmul.f32 0.03125, %v819_v48 }
 0x202   : > { %v829_v50 = vadd.f32 1e-06, %v826_v49 }
 0x203   : > { %v822_v51 = vpop.xlane.xlu0 %821 }
 0x204   : > { %3998 = vrsqrt.f32 %v829_v50  ;;  %v827_v52 = vmul.f32 0.03125, %v822_v51 }
 0x206   : > { %v830_v53 = vadd.f32 1e-06, %v827_v52 }
 0x207   : > { %v825_v54 = vpop.xlane.xlu1 %824 }
 0x208   : > { %4000 = vrsqrt.f32 %v830_v53  ;;  %v828_v55 = vmul.f32 0.03125, %v825_v54 }
 0x20a   : > { %v831_v56 = vadd.f32 1e-06, %v828_v55 }
 0x20c   : > { %4002 = vrsqrt.f32 %v831_v56 }
 0x211   : > { %v3999_v57 = vpop.eup %3998 }
 0x212   : > { %v835_v59 = vmul.f32 %v3999_v57, %v811_v31 }
 0x214   : > { %v844_v61 = vmul.f32 %v3451_v58, %v835_v59 }
 0x215   : > { %v4001_v62 = vpop.eup %4000 }
 0x216   : > { %v853_v63 = vadd.f32 %v3452_v60, %v844_v61  ;;  %v836_v0 = vmul.f32 %v4001_v62, %v812_v35 }
 0x218   : > { %3762 = vmatmul.mubr.msk.f32.vlgmr.msra.gmra.mxu1 %vm796_vm2, %v853_v63  ;;  %v845_v2 = vmul.f32 %v3451_v58, %v836_v0 }
 0x219   : > { %v4003_v3 = vpop.eup %4002  ;;  %3764 = vmatprep.mubr.msk.f32.mxu1 %vm4075_vm0, %v4074_v1 }
 0x21a   : > { %v854_v4 = vadd.f32 %v3452_v60, %v845_v2  ;;  %v837_v5 = vmul.f32 %v4003_v3, %v813_v40 }
 0x21c   : > { %3765 = vmatmul.mubr.msk.f32.gmra.mxu1 %vm796_vm2, %v854_v4  ;;  %v846_v6 = vmul.f32 %v3451_v58, %v837_v5 }
 0x21d   : > { %3767 = vmatprep.mubr.msk.f32.mxu1 %vm4075_vm0, %v4074_v1 }
 0x21e   : > { %v855_v7 = vadd.f32 %v3452_v60, %v846_v6 }
 0x220   : > { %3768 = vmatmul.mubr.msk.f32.gmra.mxu1 %vm796_vm2, %v855_v7 }
 0x221   : > { %3776 = vmatprep.mubr.msk.f32.mxu1 %vm4075_vm0, %v4074_v1 }
 0x2d8   : > { %v942_v8 = vpop.f32.mrf.mxu1 }
 0x2d9   : > { %v4319_v16 = vadd.f32 %v3453_v10, %v942_v8 }
 0x2da   : > { %v3763_v9 = vpop.f32.mrf.mxu1 }
 0x2dc   : > { %v947_v11 = vpop.f32.mrf.mxu1 }
 0x2dd   : > { %v4316_v12 = vadd.f32 %v3453_v10, %v947_v11 }
 0x2de   : > { %v3766_v13 = vpop.f32.mrf.mxu1 }
 0x2df   : > { %965 = vrot.lane.b32.xlu1 %v4316_v12, %s4076_s27 }
 0x2e0   : > { %v952_v14 = vpop.f32.mrf.mxu1 }
 0x2e1   : > { %v4321_v17 = vadd.f32 %v3453_v10, %v952_v14 }
 0x2e2   : > { %v3769_v18 = vpop.f32.mrf.mxu1 }
 0x2e3   : > { %963 = vrot.lane.b32.xlu1 %v4319_v16, %s4076_s27  ;;  %967 = vrot.lane.b32.xlu0 %v4321_v17, %s4076_s27 }
 0x2e7   : > { %1210 = vrot.lane.b32.xlu1 %v4321_v17, %s4077_s29  ;;  %1208 = vrot.lane.b32.xlu0 %v4316_v12, %s4077_s29 }
 0x2eb   : > { %1206 = vrot.lane.b32.xlu1 %v4319_v16, %s4077_s29  ;;  %1200 = vrot.lane.b32.xlu0 %v4319_v16, %s4078_s30  ;;  %s4083_s29 = smov 48  }
 0x2ef   : > { %1202 = vrot.lane.b32.xlu1 %v4316_v12, %s4078_s30  ;;  %1204 = vrot.lane.b32.xlu0 %v4321_v17, %s4078_s30  ;;  %s4084_s30 = smov 72  }
 0x351   : > { %v966_v19 = vpop.permute.xlu1 %965 }
 0x355   : > { %v968_v20 = vpop.permute.xlu0 %967  ;;  %v964_v22 = vpop.permute.xlu1 %963 }
 0x356   : > { %3771 = vmatpush3.xpose.msk.msra.mxu1 %vm969_vm4, %v968_v20 }
 0x357   : > { %3772 = vmatprep.subr.mxu1 %v4074_v1 }
 0x359   : > { %v1211_v23 = vpop.permute.xlu1 %1210  ;;  %v1209_v24 = vpop.permute.xlu0 %1208 }
 0x35a   : > { %3773 = vmatpush3.xpose.msk.msra.mxu1 %vm969_vm4, %v966_v19 }
 0x35b   : > { %3774 = vmatprep.subr.mxu1 %v4074_v1 }
 0x35d   : > { %v1207_v25 = vpop.permute.xlu1 %1206  ;;  %v1201_v26 = vpop.permute.xlu0 %1200 }
 0x35e   : > { %3775 = vmatpush3.xpose.msk.msra.mxu1 %vm969_vm4, %v964_v22 }
 0x35f   : > { %3800 = vmatprep.subr.mxu1 %v4074_v1 }
 0x361   : > { %3777 = vmatmul.mubr.msk.f32.vlgmr.msra.gmra.mxu1 %vm969_vm4, %v4319_v16  ;;  %v1203_v28 = vpop.permute.xlu1 %1202  ;;  %v1205_v29 = vpop.permute.xlu0 %1204 }
 0x362   : > { %3801 = vmatpush3.xpose.msk.msra.mxu1 %vm969_vm4, %v1211_v23  ;;  %3779 = vmatprep.mubr.msk.f32.mxu1 %vm4075_vm0, %v4074_v1 }
 0x363   : > { %3802 = vmatprep.subr.mxu1 %v4074_v1 }
 0x365   : > { %3780 = vmatmul.mubr.msk.f32.gmra.mxu1 %vm969_vm4, %v4316_v12 }
 0x366   : > { %3803 = vmatpush3.xpose.msk.msra.mxu1 %vm969_vm4, %v1209_v24  ;;  %3782 = vmatprep.mubr.msk.f32.mxu1 %vm4075_vm0, %v4074_v1 }
 0x367   : > { %3804 = vmatprep.subr.mxu1 %v4074_v1 }
 0x369   : > { %3783 = vmatmul.mubr.msk.f32.gmra.mxu1 %vm969_vm4, %v4321_v17 }
 0x36a   : > { %3805 = vmatpush3.xpose.msk.msra.mxu1 %vm969_vm4, %v1207_v25  ;;  %3806 = vmatprep.mubr.msk.f32.mxu1 %vm4075_vm0, %v4074_v1 }
 0x36b   : > { %3830 = vmatprep.subr.mxu1 %v4074_v1 }
 0x36d   : > { %3807 = vmatmul.mubr.msk.f32.vlgmr.msra.gmra.mxu1 %vm969_vm4, %v1201_v26 }
 0x36e   : > { %3809 = vmatprep.mubr.msk.f32.mxu1 %vm4075_vm0, %v4074_v1 }
 0x371   : > { %3810 = vmatmul.mubr.msk.f32.gmra.mxu1 %vm969_vm4, %v1203_v28 }
 0x372   : > { %3812 = vmatprep.mubr.msk.f32.mxu1 %vm4075_vm0, %v4074_v1 }
 0x375   : > { %3813 = vmatmul.mubr.msk.f32.gmra.mxu1 %vm969_vm4, %v1205_v29 }
 0x376   : > { %3832 = vmatprep.mubr.msk.f32.mxu1 %vm4075_vm0, %v4074_v1 }
 0x421   : > { %v1048_v30 = vpop.f32.mrf.mxu1 }
 0x422   : > { %v1062_v31 = vmul.f32 0.35355338, %v1048_v30 }
 0x423   : > { %v3778_v32 = vpop.f32.mrf.mxu1 }
 0x424   : > { %v1066_v33 = vsel %vm1065_vm5, %v1062_v31, -inf }
 0x425   : > { %1067 = vmax.xlane.f32.xlu1 %v1066_v33  ;;  %v1053_v34 = vpop.f32.mrf.mxu1 }
 0x426   : > { %v1063_v35 = vmul.f32 0.35355338, %v1053_v34 }
 0x427   : > { %v3781_v36 = vpop.f32.mrf.mxu1 }
 0x428   : > { %v1069_v37 = vsel %vm1065_vm5, %v1063_v35, -inf }
 0x429   : > { %1070 = vmax.xlane.f32.xlu0 %v1069_v37  ;;  %v1058_v38 = vpop.f32.mrf.mxu1 }
 0x42a   : > { %v1064_v39 = vmul.f32 0.35355338, %v1058_v38 }
 0x42b   : > { %v3784_v40 = vpop.f32.mrf.mxu1 }
 0x42c   : > { %v1073_v41 = vsel %vm1072_vm6, %v1064_v39, -inf }
 0x42d   : > { %1074 = vmax.xlane.f32.xlu0 %v1073_v41  ;;  %v1290_v42 = vpop.f32.mrf.mxu1 }
 0x42e   : > { %v1304_v43 = vmul.f32 0.35355338, %v1290_v42 }
 0x42f   : > { %v3808_v44 = vpop.f32.mrf.mxu1 }
 0x430   : > { %v1307_v45 = vsel %vm1065_vm5, %v1304_v43, -inf }
 0x431   : > { %1308 = vmax.xlane.f32.xlu0 %v1307_v45  ;;  %v1295_v46 = vpop.f32.mrf.mxu1 }
 0x432   : > { %v1305_v47 = vmul.f32 0.35355338, %v1295_v46 }
 0x433   : > { %v3811_v48 = vpop.f32.mrf.mxu1 }
 0x434   : > { %v1310_v49 = vsel %vm1065_vm5, %v1305_v47, -inf }
 0x435   : > { %1311 = vmax.xlane.f32.xlu1 %v1310_v49  ;;  %v1300_v50 = vpop.f32.mrf.mxu1 }
 0x436   : > { %v1306_v51 = vmul.f32 0.35355338, %v1300_v50 }
 0x437   : > { %v3814_v52 = vpop.f32.mrf.mxu1 }
 0x438   : > { %v1313_v53 = vsel %vm1072_vm6, %v1306_v51, -inf  ;;  %v957_v52 = vld [vmem:[%s5239_s8 + $0x8] sm:$0xff] }
 0x439   : > { %1314 = vmax.xlane.f32.xlu0 %v1313_v53  ;;  %3831 = vmatpush3.msra.mxu1 %v957_v52 }
 0x43a   : > { %3852 = vmatprep.subr.mxu1 %v4074_v1 }
 0x446   : > { %1104 = vrot.lane.b32.xlu1 %v4321_v17, %s4079_s0 }
 0x44a   : > { %1100 = vrot.lane.b32.xlu1 %v4319_v16, %s4079_s0 }
 0x44e   : > { %1344 = vrot.lane.b32.xlu1 %v4321_v17, %s4080_s23 }
 0x44f   : > { %1102 = vrot.lane.b32.xlu0 %v4316_v12, %s4079_s0  ;;  %s4085_s0 = smov 104  }
 0x4ae   : > { %v1068_v54 = vpop.xlane.xlu1 %1067 }
 0x4af   : > { %v1076_v55 = vsub.f32 %v1062_v31, %v1068_v54 }
 0x4b1   : > { %v1079_v56 = vmul.f32 1.442695, %v1076_v55 }
 0x4b2   : > { %v1071_v57 = vpop.xlane.xlu0 %1070 }
 0x4b3   : > { %4004 = vpow2.f32 %v1079_v56  ;;  %v1077_v58 = vsub.f32 %v1063_v35, %v1071_v57 }
 0x4b5   : > { %v1081_v59 = vmul.f32 1.442695, %v1077_v58 }
 0x4b6   : > { %v1075_v60 = vpop.xlane.xlu0 %1074 }
 0x4b7   : > { %4006 = vpow2.f32 %v1081_v59  ;;  %v1078_v61 = vsub.f32 %v1064_v39, %v1075_v60 }
 0x4b9   : > { %v1083_v62 = vmul.f32 1.442695, %v1078_v61 }
 0x4ba   : > { %v1309_v63 = vpop.xlane.xlu0 %1308 }
 0x4bb   : > { %4008 = vpow2.f32 %v1083_v62  ;;  %v1316_v0 = vsub.f32 %v1304_v43, %v1309_v63 }
 0x4bd   : > { %v1319_v2 = vmul.f32 1.442695, %v1316_v0 }
 0x4be   : > { %v1312_v3 = vpop.xlane.xlu1 %1311 }
 0x4bf   : > { %4010 = vpow2.f32 %v1319_v2  ;;  %v1317_v4 = vsub.f32 %v1305_v47, %v1312_v3 }
 0x4c0   : > { %v4005_v5 = vpop.eup %4004 }
 0x4c1   : > { %v1321_v6 = vmul.f32 1.442695, %v1317_v4  ;;  %v1085_v7 = vsel %vm1065_vm5, %v4005_v5, 0.0 }
 0x4c2   : > { %1086 = vadd.xlane.f32.xlu1 %v1085_v7  ;;  %v1105_v8 = vpop.permute.xlu1 %1104  ;;  %v1315_v9 = vpop.xlane.xlu0 %1314 }
 0x4c3   : > { %4012 = vpow2.f32 %v1321_v6  ;;  %v1318_v10 = vsub.f32 %v1306_v51, %v1315_v9  ;;  %3786 = vmatpush3.msk.msra.mxu0 %vm1117_vm7, %v1105_v8  ;;  %v956_v51 = vld [vmem:[%s5239_s8] sm:$0xff] }
 0x4c4   : > { %v4007_v11 = vpop.eup %4006  ;;  %3787 = vmatprep.subr.mxu0 %v4074_v1 }
 0x4c5   : > { %v1323_v13 = vmul.f32 1.442695, %v1318_v10  ;;  %v1088_v14 = vsel %vm1065_vm5, %v4007_v11, 0.0 }
 0x4c6   : > { %1089 = vadd.xlane.f32.xlu0 %v1088_v14  ;;  %v1103_v18 = vpop.permute.xlu0 %1102  ;;  %v1101_v20 = vpop.permute.xlu1 %1100 }
 0x4c7   : > { %4014 = vpow2.f32 %v1323_v13  ;;  %3788 = vmatpush3.msra.mxu0 %v1103_v18 }
 0x4c8   : > { %v4009_v19 = vpop.eup %4008  ;;  %3789 = vmatprep.subr.mxu0 %v4074_v1 }
 0x4c9   : > { %3790 = vmatpush3.msra.mxu0 %v1101_v20  ;;  %v1091_v22 = vsel %vm1072_vm6, %v4009_v19, 0.0 }
 0x4ca   : > { %1092 = vadd.xlane.f32.xlu1 %v1091_v22  ;;  %3815 = vmatprep.subr.mxu0 %v4074_v1  ;;  %v1345_v30 = vpop.permute.xlu1 %1344 }
 0x4cc   : > { %v4011_v23 = vpop.eup %4010 }
 0x4cd   : > { %v1325_v24 = vsel %vm1065_vm5, %v4011_v23, 0.0 }
 0x4ce   : > { %1326 = vadd.xlane.f32.xlu0 %v1325_v24 }
 0x4d0   : > { %v4013_v25 = vpop.eup %4012 }
 0x4d1   : > { %v1328_v26 = vsel %vm1065_vm5, %v4013_v25, 0.0 }
 0x4d2   : > { %1329 = vadd.xlane.f32.xlu1 %v1328_v26 }
 0x4d4   : > { %v4015_v28 = vpop.eup %4014 }
 0x4d5   : > { %v1331_v29 = vsel %vm1072_vm6, %v4015_v28, 0.0 }
 0x4d6   : > { %1332 = vadd.xlane.f32.xlu0 %v1331_v29 }
 0x4e3   : > { %1342 = vrot.lane.b32.xlu1 %v4316_v12, %s4080_s23 }
 0x4e7   : > { %1627 = vrot.lane.b32.xlu1 %v4321_v17, %s4081_s1 }
 0x4eb   : > { %1623 = vrot.lane.b32.xlu1 %v4319_v16, %s4081_s1 }
 0x4ec   : > { %1340 = vrot.lane.b32.xlu0 %v4319_v16, %s4080_s23 }
 0x4ef   : > { %1619 = vrot.lane.b32.xlu1 %v4316_v12, %s4082_s24 }
 0x4f0   : > { %1625 = vrot.lane.b32.xlu0 %v4316_v12, %s4081_s1  ;;  %s3446_s1 = sshll.u32 %s5272_s28, 3 }
 0x4f1   : > { %s681_s25 = scalar_lea.vmem %s5253_s22, %s3446_s1 }
 0x4f4   : > { %1617 = vrot.lane.b32.xlu0 %v4319_v16, %s4082_s24 }
 0x4f8   : > { %1621 = vrot.lane.b32.xlu0 %v4321_v17, %s4082_s24  ;;  %s4086_s24 = smov 40  }
 0x54b   : > { %v1087_v31 = vpop.xlane.xlu1 %1086 }
 0x54c   : > { %4016 = vrcp.f32 %v1087_v31 }
 0x54f   : > { %v1090_v32 = vpop.xlane.xlu0 %1089 }
 0x550   : > { %4018 = vrcp.f32 %v1090_v32 }
 0x553   : > { %v1093_v33 = vpop.xlane.xlu1 %1092 }
 0x554   : > { %4020 = vrcp.f32 %v1093_v33 }
 0x557   : > { %v1327_v34 = vpop.xlane.xlu0 %1326 }
 0x558   : > { %4022 = vrcp.f32 %v1327_v34 }
 0x559   : > { %v4017_v35 = vpop.eup %4016 }
 0x55a   : > { %v1097_v36 = vmul.f32 %v4017_v35, %v4005_v5 }
 0x55b   : > { %v1330_v37 = vpop.xlane.xlu1 %1329 }
 0x55c   : > { %4024 = vrcp.f32 %v1330_v37  ;;  %3792 = vmatmul.mubr.msk.f32.vlgmr.msra.gmra.mxu0 %vm1065_vm5, %v1097_v36 }
 0x55d   : > { %v4019_v38 = vpop.eup %4018  ;;  %3816 = vmatpush3.msk.msra.mxu0 %vm1117_vm7, %v1345_v30  ;;  %3794 = vmatprep.mubr.msk.f32.mxu0 %vm4075_vm0, %v4074_v1 }
 0x55e   : > { %3817 = vmatprep.subr.mxu0 %v4074_v1  ;;  %v1098_v39 = vmul.f32 %v4019_v38, %v4007_v11 }
 0x55f   : > { %v1343_v40 = vpop.permute.xlu1 %1342  ;;  %v1333_v41 = vpop.xlane.xlu0 %1332 }
 0x560   : > { %4026 = vrcp.f32 %v1333_v41  ;;  %3795 = vmatmul.mubr.msk.f32.gmra.mxu0 %vm1065_vm5, %v1098_v39 }
 0x561   : > { %v4021_v42 = vpop.eup %4020  ;;  %3818 = vmatpush3.msra.mxu0 %v1343_v40  ;;  %3797 = vmatprep.mubr.msk.f32.mxu0 %vm4075_vm0, %v4074_v1 }
 0x562   : > { %3819 = vmatprep.subr.mxu0 %v4074_v1  ;;  %v1099_v43 = vmul.f32 %v4021_v42, %v4009_v19 }
 0x563   : > { %v1341_v44 = vpop.permute.xlu0 %1340  ;;  %v1628_v60 = vpop.permute.xlu1 %1627 }
 0x564   : > { %3798 = vmatmul.mubr.msk.f32.gmra.mxu0 %vm1065_vm5, %v1099_v43 }
 0x565   : > { %v4023_v45 = vpop.eup %4022  ;;  %3820 = vmatpush3.msra.mxu0 %v1341_v44  ;;  %3821 = vmatprep.mubr.msk.f32.mxu0 %vm4075_vm0, %v4074_v1 }
 0x566   : > { %v1337_v46 = vmul.f32 %v4023_v45, %v4011_v23  ;;  %3841 = vmatprep.subr.mxu0 %v4074_v1 }
 0x567   : > { %v1626_v63 = vpop.permute.xlu0 %1625  ;;  %v1624_v3 = vpop.permute.xlu1 %1623 }
 0x568   : > { %3822 = vmatmul.mubr.msk.f32.vlgmr.msra.gmra.mxu0 %vm1065_vm5, %v1337_v46 }
 0x569   : > { %v4025_v47 = vpop.eup %4024  ;;  %3824 = vmatprep.mubr.msk.f32.mxu0 %vm4075_vm0, %v4074_v1  ;;  %3842 = vmatpush3.msra.mxu0 %v956_v51 }
 0x56a   : > { %v1338_v48 = vmul.f32 %v4025_v47, %v4013_v25  ;;  %3867 = vmatprep.subr.mxu0 %v4074_v1 }
 0x56b   : > { %v1618_v5 = vpop.permute.xlu0 %1617  ;;  %v1620_v6 = vpop.permute.xlu1 %1619 }
 0x56c   : > { %3825 = vmatmul.mubr.msk.f32.gmra.mxu0 %vm1065_vm5, %v1338_v48 }
 0x56d   : > { %v4027_v49 = vpop.eup %4026  ;;  %3827 = vmatprep.mubr.msk.f32.mxu0 %vm4075_vm0, %v4074_v1 }
 0x56e   : > { %v1339_v50 = vmul.f32 %v4027_v49, %v4015_v28 }
 0x56f   : > { %v1622_v7 = vpop.permute.xlu0 %1621 }
 0x570   : > { %3828 = vmatmul.mubr.msk.f32.gmra.mxu0 %vm1065_vm5, %v1339_v50 }
 0x571   : > { %3843 = vmatprep.mubr.msk.f32.mxu0 %vm4075_vm0, %v4074_v1 }
 0x61c   : > { %v1186_v53 = vpop.f32.mrf.mxu0 }
 0x61d   : > { %3844 = vmatmul.mubr.msk.f32.vlgmr.msra.gmra.mxu0 %vm969_vm4, %v1186_v53 }
 0x61e   : > { %v3793_v54 = vpop.f32.mrf.mxu0  ;;  %3846 = vmatprep.mubr.msk.f32.mxu0 %vm4075_vm0, %v4074_v1 }
 0x620   : > { %v1191_v55 = vpop.f32.mrf.mxu0 }
 0x621   : > { %3847 = vmatmul.mubr.msk.f32.gmra.mxu0 %vm969_vm4, %v1191_v55 }
 0x622   : > { %v3796_v56 = vpop.f32.mrf.mxu0  ;;  %3849 = vmatprep.mubr.msk.f32.mxu0 %vm4075_vm0, %v4074_v1 }
 0x624   : > { %v1196_v57 = vpop.f32.mrf.mxu0 }
 0x625   : > { %3850 = vmatmul.mubr.msk.f32.gmra.mxu0 %vm969_vm4, %v1196_v57 }
 0x626   : > { %v3799_v58 = vpop.f32.mrf.mxu0  ;;  %3873 = vmatprep.mubr.msk.f32.mxu0 %vm4075_vm0, %v4074_v1 }
 0x628   : > { %v1425_v59 = vpop.f32.mrf.mxu0 }
 0x629   : > { %3833 = vmatmul.mubr.msk.f32.vlgmr.msra.gmra.mxu1 %vm969_vm4, %v1425_v59 }
 0x62a   : > { %3853 = vmatpush3.xpose.msk.msra.mxu1 %vm969_vm4, %v1628_v60  ;;  %v3823_v61 = vpop.f32.mrf.mxu0  ;;  %3835 = vmatprep.mubr.msk.f32.mxu1 %vm4075_vm0, %v4074_v1 }
 0x62b   : > { %3854 = vmatprep.subr.mxu1 %v4074_v1 }
 0x62c   : > { %v1430_v62 = vpop.f32.mrf.mxu0 }
 0x62d   : > { %3836 = vmatmul.mubr.msk.f32.gmra.mxu1 %vm969_vm4, %v1430_v62 }
 0x62e   : > { %3855 = vmatpush3.xpose.msk.msra.mxu1 %vm969_vm4, %v1626_v63  ;;  %v3826_v0 = vpop.f32.mrf.mxu0  ;;  %3838 = vmatprep.mubr.msk.f32.mxu1 %vm4075_vm0, %v4074_v1 }
 0x62f   : > { %3856 = vmatprep.subr.mxu1 %v4074_v1 }
 0x630   : > { %v1435_v2 = vpop.f32.mrf.mxu0 }
 0x631   : > { %3839 = vmatmul.mubr.msk.f32.gmra.mxu1 %vm969_vm4, %v1435_v2 }
 0x632   : > { %3857 = vmatpush3.xpose.msk.msra.mxu1 %vm969_vm4, %v1624_v3  ;;  %v3829_v4 = vpop.f32.mrf.mxu0  ;;  %3858 = vmatprep.mubr.msk.f32.mxu1 %vm4075_vm0, %v4074_v1 }
 0x633   : > { %3882 = vmatprep.subr.mxu1 %v4074_v1 }
 0x635   : > { %3859 = vmatmul.mubr.msk.f32.vlgmr.msra.gmra.mxu1 %vm969_vm4, %v1618_v5 }
 0x636   : > { %3861 = vmatprep.mubr.msk.f32.mxu1 %vm4075_vm0, %v4074_v1 }
 0x639   : > { %3862 = vmatmul.mubr.msk.f32.gmra.mxu1 %vm969_vm4, %v1620_v6 }
 0x63a   : > { %3864 = vmatprep.mubr.msk.f32.mxu1 %vm4075_vm0, %v4074_v1 }
 0x63d   : > { %3865 = vmatmul.mubr.msk.f32.gmra.mxu1 %vm969_vm4, %v1622_v7 }
 0x63e   : > { %3884 = vmatprep.mubr.msk.f32.mxu1 %vm4075_vm0, %v4074_v1 }
 0x6dd   : > { %v1603_v8 = vpop.f32.mrf.mxu0 }
 0x6df   : > { %v3845_v9 = vpop.f32.mrf.mxu0 }
 0x6e0   : > { %v958_v9 = vld [vmem:[%s5239_s8 + $0x10] sm:$0xff] }
 0x6e1   : > { %v1608_v10 = vpop.f32.mrf.mxu0  ;;  %3883 = vmatpush3.msra.mxu1 %v958_v9 }
 0x6e2   : > { %3908 = vmatprep.subr.mxu1 %v4074_v1 }
 0x6e3   : > { %v3848_v11 = vpop.f32.mrf.mxu0 }
 0x6e5   : > { %v1613_v13 = vpop.f32.mrf.mxu0 }
 0x6e7   : > { %v3851_v14 = vpop.f32.mrf.mxu0 }
 0x6e9   : > { %v1514_v18 = vpop.f32.mrf.mxu1 }
 0x6ea   : > { %v4458_v19 = vadd.f32 %v1603_v8, %v1514_v18 }
 0x6eb   : > { %v3834_v20 = vpop.f32.mrf.mxu1 }
 0x6ed   : > { %v1519_v22 = vpop.f32.mrf.mxu1 }
 0x6ee   : > { %v4460_v23 = vadd.f32 %v1608_v10, %v1519_v22 }
 0x6ef   : > { %v3837_v24 = vpop.f32.mrf.mxu1 }
 0x6f1   : > { %v1524_v25 = vpop.f32.mrf.mxu1 }
 0x6f2   : > { %v4462_v26 = vadd.f32 %v1613_v13, %v1524_v25 }
 0x6f3   : > { %v3840_v28 = vpop.f32.mrf.mxu1 }
 0x6f5   : > { %v1707_v29 = vpop.f32.mrf.mxu1 }
 0x6f6   : > { %v1721_v30 = vmul.f32 0.35355338, %v1707_v29 }
 0x6f7   : > { %v3860_v31 = vpop.f32.mrf.mxu1 }
 0x6f8   : > { %v1724_v32 = vsel %vm1065_vm5, %v1721_v30, -inf }
 0x6f9   : > { %1725 = vmax.xlane.f32.xlu1 %v1724_v32  ;;  %v1712_v33 = vpop.f32.mrf.mxu1 }
 0x6fa   : > { %v1722_v34 = vmul.f32 0.35355338, %v1712_v33 }
 0x6fb   : > { %v3863_v35 = vpop.f32.mrf.mxu1 }
 0x6fc   : > { %v1727_v36 = vsel %vm1065_vm5, %v1722_v34, -inf }
 0x6fd   : > { %1728 = vmax.xlane.f32.xlu0 %v1727_v36  ;;  %v1717_v37 = vpop.f32.mrf.mxu1 }
 0x6fe   : > { %v1723_v38 = vmul.f32 0.35355338, %v1717_v37 }
 0x6ff   : > { %v3866_v39 = vpop.f32.mrf.mxu1 }
 0x700   : > { %v1730_v40 = vsel %vm1072_vm6, %v1723_v38, -inf }
 0x701   : > { %1731 = vmax.xlane.f32.xlu0 %v1730_v40 }
 0x70a   : > { %1761 = vrot.lane.b32.xlu1 %v4321_v17, %s4083_s29 }
 0x70e   : > { %1757 = vrot.lane.b32.xlu1 %v4319_v16, %s4083_s29 }
 0x712   : > { %1958 = vrot.lane.b32.xlu1 %v4321_v17, %s4084_s30 }
 0x716   : > { %1956 = vrot.lane.b32.xlu1 %v4316_v12, %s4084_s30 }
 0x782   : > { %v1726_v41 = vpop.xlane.xlu1 %1725 }
 0x783   : > { %v1733_v42 = vsub.f32 %v1721_v30, %v1726_v41 }
 0x785   : > { %v1736_v43 = vmul.f32 1.442695, %v1733_v42 }
 0x786   : > { %v1762_v44 = vpop.permute.xlu1 %1761  ;;  %v1729_v45 = vpop.xlane.xlu0 %1728 }
 0x787   : > { %4028 = vpow2.f32 %v1736_v43  ;;  %v1734_v46 = vsub.f32 %v1722_v34, %v1729_v45  ;;  %3868 = vmatpush3.msk.msra.mxu0 %vm1117_vm7, %v1762_v44 }
 0x788   : > { %3869 = vmatprep.subr.mxu0 %v4074_v1 }
 0x789   : > { %v1738_v47 = vmul.f32 1.442695, %v1734_v46 }
 0x78a   : > { %v1732_v52 = vpop.xlane.xlu0 %1731  ;;  %v1758_v57 = vpop.permute.xlu1 %1757 }
 0x78b   : > { %4030 = vpow2.f32 %v1738_v47  ;;  %v1735_v53 = vsub.f32 %v1723_v38, %v1732_v52 }
 0x78d   : > { %v1740_v54 = vmul.f32 1.442695, %v1735_v53  ;;  %v959_v53 = vld [vmem:[%s5239_s8 + $0x18] sm:$0xff] }
 0x78e   : > { %v1959_v58 = vpop.permute.xlu1 %1958 }
 0x78f   : > { %4032 = vpow2.f32 %v1740_v54 }
 0x792   : > { %v1957_v59 = vpop.permute.xlu1 %1956 }
 0x794   : > { %v4029_v48 = vpop.eup %4028 }
 0x795   : > { %v1742_v49 = vsel %vm1065_vm5, %v4029_v48, 0.0 }
 0x796   : > { %1743 = vadd.xlane.f32.xlu0 %v1742_v49 }
 0x798   : > { %v4031_v50 = vpop.eup %4030 }
 0x799   : > { %v1745_v51 = vsel %vm1065_vm5, %v4031_v50, 0.0 }
 0x79a   : > { %1746 = vadd.xlane.f32.xlu1 %v1745_v51 }
 0x79c   : > { %v4033_v55 = vpop.eup %4032 }
 0x79d   : > { %v1748_v56 = vsel %vm1072_vm6, %v4033_v55, 0.0 }
 0x7ab   : > { %1948 = vrot.lane.b32.xlu1 %v4319_v16, %s4085_s0 }
 0x7ac   : > { %1759 = vrot.lane.b32.xlu0 %v4316_v12, %s4083_s29 }
 0x7af   : > { %1952 = vrot.lane.b32.xlu1 %v4321_v17, %s4085_s0 }
 0x7cb   : > { %1749 = vadd.xlane.f32.xlu0 %v1748_v56 }
 0x7e1   : > { %1954 = vrot.lane.b32.xlu0 %v4319_v16, %s4084_s30 }
 0x81f   : > { %v1744_v60 = vpop.xlane.xlu0 %1743 }
 0x820   : > { %4034 = vrcp.f32 %v1744_v60 }
 0x823   : > { %v1747_v61 = vpop.xlane.xlu1 %1746  ;;  %v1760_v62 = vpop.permute.xlu0 %1759 }
 0x824   : > { %4036 = vrcp.f32 %v1747_v61  ;;  %3870 = vmatpush3.msra.mxu0 %v1760_v62 }
 0x825   : > { %3871 = vmatprep.subr.mxu0 %v4074_v1 }
 0x826   : > { %3872 = vmatpush3.msra.mxu0 %v1758_v57 }
 0x827   : > { %3893 = vmatprep.subr.mxu0 %v4074_v1  ;;  %v1949_v8 = vpop.permute.xlu1 %1948 }
 0x82d   : > { %v4035_v63 = vpop.eup %4034 }
 0x82e   : > { %v1754_v0 = vmul.f32 %v4035_v63, %v4029_v48 }
 0x830   : > { %3874 = vmatmul.mubr.msk.f32.vlgmr.msra.gmra.mxu0 %vm1065_vm5, %v1754_v0 }
 0x831   : > { %v4037_v2 = vpop.eup %4036  ;;  %3894 = vmatpush3.xpose.msk.msra.mxu0 %vm969_vm4, %v1959_v58  ;;  %3876 = vmatprep.mubr.msk.f32.mxu0 %vm4075_vm0, %v4074_v1 }
 0x832   : > { %3895 = vmatprep.subr.mxu0 %v4074_v1  ;;  %v1755_v3 = vmul.f32 %v4037_v2, %v4031_v50 }
 0x834   : > { %3877 = vmatmul.mubr.msk.f32.gmra.mxu0 %vm1065_vm5, %v1755_v3 }
 0x835   : > { %3896 = vmatpush3.xpose.msk.msra.mxu0 %vm969_vm4, %v1957_v59  ;;  %3879 = vmatprep.mubr.msk.f32.mxu0 %vm4075_vm0, %v4074_v1 }
 0x836   : > { %3897 = vmatprep.subr.mxu0 %v4074_v1 }
 0x854   : > { %v1750_v4 = vpop.xlane.xlu0 %1749 }
 0x855   : > { %4038 = vrcp.f32 %v1750_v4 }
 0x858   : > { %v1955_v5 = vpop.permute.xlu0 %1954 }
 0x859   : > { %3898 = vmatpush3.xpose.msk.msra.mxu0 %vm969_vm4, %v1955_v5 }
 0x85a   : > { %3923 = vmatprep.subr.mxu0 %v4074_v1 }
 0x862   : > { %v4039_v6 = vpop.eup %4038 }
 0x863   : > { %v1756_v7 = vmul.f32 %v4039_v6, %v4033_v55 }
 0x865   : > { %3880 = vmatmul.mubr.msk.f32.gmra.mxu0 %vm1065_vm5, %v1756_v7 }
 0x866   : > { %3899 = vmatprep.mubr.msk.f32.mxu0 %vm4075_vm0, %v4074_v1 }
 0x869   : > { %3900 = vmatmul.mubr.msk.f32.vlgmr.msra.gmra.mxu0 %vm969_vm4, %v1949_v8 }
 0x86a   : > { %3902 = vmatprep.mubr.msk.f32.mxu0 %vm4075_vm0, %v4074_v1  ;;  %3924 = vmatpush3.msra.mxu0 %v959_v53 }
 0x86b   : > { %3951 = vmatprep.subr.mxu0 %v4074_v1 }
 0x8f0   : > { %v1842_v10 = vpop.f32.mrf.mxu0 }
 0x8f1   : > { %3885 = vmatmul.mubr.msk.f32.vlgmr.msra.gmra.mxu1 %vm969_vm4, %v1842_v10 }
 0x8f2   : > { %v3875_v11 = vpop.f32.mrf.mxu0  ;;  %3887 = vmatprep.mubr.msk.f32.mxu1 %vm4075_vm0, %v4074_v1 }
 0x8f3   : > { %v3509_v11 = vld [vmem:[%s5240_s9] ss:$0 sm:$0xff] }
 0x8f4   : > { %v1847_v13 = vpop.f32.mrf.mxu0 }
 0x8f5   : > { %3888 = vmatmul.mubr.msk.f32.gmra.mxu1 %vm969_vm4, %v1847_v13 }
 0x8f6   : > { %v3878_v14 = vpop.f32.mrf.mxu0  ;;  %3890 = vmatprep.mubr.msk.f32.mxu1 %vm4075_vm0, %v4074_v1 }
 0x925   : > { %v1852_v18 = vpop.f32.mrf.mxu0 }
 0x926   : > { %3891 = vmatmul.mubr.msk.f32.gmra.mxu1 %vm969_vm4, %v1852_v18 }
 0x927   : > { %v3881_v20 = vpop.f32.mrf.mxu0  ;;  %3914 = vmatprep.mubr.msk.f32.mxu1 %vm4075_vm0, %v4074_v1 }
 0x929   : > { %v2038_v22 = vpop.f32.mrf.mxu0 }
 0x92a   : > { %v2052_v24 = vmul.f32 0.35355338, %v2038_v22 }
 0x92b   : > { %v3901_v25 = vpop.f32.mrf.mxu0 }
 0x92c   : > { %v2055_v28 = vsel %vm1065_vm5, %v2052_v24, -inf }
 0x92d   : > { %2056 = vmax.xlane.f32.xlu0 %v2055_v28 }
 0x943   : > { %1950 = vrot.lane.b32.xlu0 %v4316_v12, %s4085_s0 }
 0x947   : > { %2092 = vrot.lane.b32.xlu0 %v4321_v17, %s4086_s24 }
 0x94b   : > { %2088 = vrot.lane.b32.xlu0 %v4319_v16, %s4086_s24  ;;  %v1953_v16 = vpop.permute.xlu1 %1952 }
 0x9b1   : > { %v1931_v29 = vpop.f32.mrf.mxu1 }
 0x9b2   : > { %v4524_v30 = vadd.f32 %v1931_v29, %v4458_v19 }
 0x9b3   : > { %v3886_v31 = vpop.f32.mrf.mxu1 }
 0x9b5   : > { %v1936_v32 = vpop.f32.mrf.mxu1 }
 0x9b6   : > { %v4527_v33 = vadd.f32 %v1936_v32, %v4460_v23  ;;  %v2057_v34 = vpop.xlane.xlu0 %2056 }
 0x9b7   : > { %v2064_v35 = vsub.f32 %v2052_v24, %v2057_v34  ;;  %v3889_v36 = vpop.f32.mrf.mxu1  ;;  %v2354_v34 = vld [vmem:[%s5243_s12 + $0x18] sm:$0xff] }
 0x9b8   : > { %v2352_v36 = vld [vmem:[%s5243_s12 + $0x8] sm:$0xff] }
 0x9b9   : > { %v2067_v37 = vmul.f32 1.442695, %v2064_v35  ;;  %v2353_v35 = vld [vmem:[%s5243_s12 + $0x10] sm:$0xff] }
 0x9ba   : > { %v1951_v38 = vpop.permute.xlu0 %1950 }
 0x9bb   : > { %4040 = vpow2.f32 %v2067_v37  ;;  %3903 = vmatmul.mubr.msk.f32.gmra.mxu0 %vm969_vm4, %v1951_v38  ;;  %v2351_v37 = vld [vmem:[%s5243_s12] sm:$0xff] }
 0x9bc   : > { %3905 = vmatprep.mubr.msk.f32.mxu0 %vm4075_vm0, %v4074_v1 }
 0x9be   : > { %v2093_v17 = vpop.permute.xlu0 %2092 }
 0x9bf   : > { %3906 = vmatmul.mubr.msk.f32.gmra.mxu0 %vm969_vm4, %v1953_v16  ;;  %3909 = vmatpush3.msk.msra.mxu1 %vm1117_vm7, %v2093_v17 }
 0x9c0   : > { %3910 = vmatprep.subr.mxu1 %v4074_v1  ;;  %3925 = vmatprep.mubr.msk.f32.mxu0 %vm4075_vm0, %v4074_v1 }
 0x9c2   : > { %v2089_v44 = vpop.permute.xlu0 %2088 }
 0x9c8   : > { %v4041_v19 = vpop.eup %4040 }
 0x9c9   : > { %v2073_v23 = vsel %vm1065_vm5, %v4041_v19, 0.0 }
 0x9ca   : > { %2074 = vadd.xlane.f32.xlu1 %v2073_v23  ;;  %v4599_v23 = vld [vmem:[%s5241_s10] ss:$0 sm:$0xff] }
 0x9db   : > { %2090 = vrot.lane.b32.xlu1 %v4316_v12, %s4086_s24 }
 0x9e6   : > { %v1941_v39 = vpop.f32.mrf.mxu1 }
 0x9e7   : > { %v4540_v40 = vadd.f32 %v1941_v39, %v4462_v26 }
 0x9e8   : > { %v3892_v41 = vpop.f32.mrf.mxu1 }
 0x9e9   : > { %v4604_v41 = vld [vmem:[%s5242_s11] ss:$0 sm:$0xff] }
 0xa53   : > { %v2075_v42 = vpop.xlane.xlu1 %2074 }
 0xa54   : > { %4042 = vrcp.f32 %v2075_v42 }
 0xa57   : > { %v2091_v43 = vpop.permute.xlu1 %2090 }
 0xa58   : > { %3911 = vmatpush3.msra.mxu1 %v2091_v43 }
 0xa59   : > { %3912 = vmatprep.subr.mxu1 %v4074_v1 }
 0xa5a   : > { %3913 = vmatpush3.msra.mxu1 %v2089_v44 }
 0xa5b   : > { %3934 = vmatprep.subr.mxu1 %v4074_v1 }
 0xa61   : > { %v4043_v45 = vpop.eup %4042 }
 0xa62   : > { %v2085_v46 = vmul.f32 %v4043_v45, %v4041_v19 }
 0xa64   : > { %3915 = vmatmul.mubr.msk.f32.vlgmr.msra.gmra.mxu1 %vm1065_vm5, %v2085_v46 }
 0xa65   : > { %3917 = vmatprep.mubr.msk.f32.mxu1 %vm4075_vm0, %v4074_v1  ;;  %3935 = vmatpush3.msra.mxu1 %v2354_v34 }
 0xa66   : > { %3936 = vmatprep.subr.mxu1 %v4074_v1 }
 0xa67   : > { %3937 = vmatpush3.msra.mxu1 %v2353_v35 }
 0xa68   : > { %3938 = vmatprep.subr.mxu1 %v4074_v1 }
 0xa69   : > { %3939 = vmatpush3.msra.mxu1 %v2352_v36 }
 0xa6a   : > { %3940 = vmatprep.subr.mxu1 %v4074_v1 }
 0xa6b   : > { %3941 = vmatpush3.msra.mxu1 %v2351_v37 }
 0xa7b   : > { %v2043_v12 = vpop.f32.mrf.mxu0 }
 0xa7c   : > { %v2053_v26 = vmul.f32 0.35355338, %v2043_v12 }
 0xa7d   : > { %v3904_v47 = vpop.f32.mrf.mxu0 }
 0xa7e   : > { %v2058_v48 = vsel %vm1065_vm5, %v2053_v26, -inf }
 0xa7f   : > { %2059 = vmax.xlane.f32.xlu1 %v2058_v48  ;;  %v2048_v49 = vpop.f32.mrf.mxu0 }
 0xa80   : > { %v2054_v50 = vmul.f32 0.35355338, %v2048_v49 }
 0xa81   : > { %v3907_v51 = vpop.f32.mrf.mxu0 }
 0xa82   : > { %v2061_v52 = vsel %vm1072_vm6, %v2054_v50, -inf }
 0xa83   : > { %2062 = vmax.xlane.f32.xlu0 %v2061_v52 }
 0xb08   : > { %v2060_v54 = vpop.xlane.xlu1 %2059 }
 0xb09   : > { %v2065_v55 = vsub.f32 %v2053_v26, %v2060_v54  ;;  %v2481_v54 = vld [vmem:[%s5245_s14 + $0x18] sm:$0xff] }
 0xb0b   : > { %v2069_v56 = vmul.f32 1.442695, %v2065_v55  ;;  %v2480_v55 = vld [vmem:[%s5245_s14 + $0x10] sm:$0xff] }
 0xb0c   : > { %v2063_v57 = vpop.xlane.xlu0 %2062 }
 0xb0d   : > { %4044 = vpow2.f32 %v2069_v56  ;;  %v2066_v58 = vsub.f32 %v2054_v50, %v2063_v57  ;;  %v2479_v56 = vld [vmem:[%s5245_s14 + $0x8] sm:$0xff]  ;;  %v2478_v57 = vld [vmem:[%s5245_s14] sm:$0xff] }
 0xb0f   : > { %v2071_v59 = vmul.f32 1.442695, %v2066_v58 }
 0xb11   : > { %4046 = vpow2.f32 %v2071_v59 }
 0xb1a   : > { %v4045_v60 = vpop.eup %4044 }
 0xb1b   : > { %v2076_v61 = vsel %vm1065_vm5, %v4045_v60, 0.0 }
 0xb1c   : > { %2077 = vadd.xlane.f32.xlu0 %v2076_v61 }
 0xb1e   : > { %v4047_v62 = vpop.eup %4046 }
 0xb1f   : > { %v2079_v63 = vsel %vm1072_vm6, %v4047_v62, 0.0 }
 0xb20   : > { %2080 = vadd.xlane.f32.xlu0 %v2079_v63 }
 0xb24   : > { %v2173_v0 = vpop.f32.mrf.mxu1 }
 0xb25   : > { %3926 = vmatmul.mubr.msk.f32.vlgmr.msra.gmra.mxu0 %vm969_vm4, %v2173_v0 }
 0xb26   : > { %v3916_v2 = vpop.f32.mrf.mxu1  ;;  %3928 = vmatprep.mubr.msk.f32.mxu0 %vm4075_vm0, %v4074_v1 }
 0xba5   : > { %v2078_v3 = vpop.xlane.xlu0 %2077 }
 0xba6   : > { %4048 = vrcp.f32 %v2078_v3 }
 0xba9   : > { %v2081_v4 = vpop.xlane.xlu0 %2080 }
 0xbaa   : > { %4050 = vrcp.f32 %v2081_v4 }
 0xbb3   : > { %v4049_v5 = vpop.eup %4048 }
 0xbb4   : > { %v2086_v6 = vmul.f32 %v4049_v5, %v4045_v60  ;;  %v3512_v5 = vld [vmem:[%s5244_s13] ss:$0 sm:$0xff] }
 0xbb6   : > { %3918 = vmatmul.mubr.msk.f32.gmra.mxu1 %vm1065_vm5, %v2086_v6 }
 0xbb7   : > { %v4051_v7 = vpop.eup %4050  ;;  %3920 = vmatprep.mubr.msk.f32.mxu1 %vm4075_vm0, %v4074_v1 }
 0xbb8   : > { %v2087_v8 = vmul.f32 %v4051_v7, %v4047_v62 }
 0xbba   : > { %3921 = vmatmul.mubr.msk.f32.gmra.mxu1 %vm1065_vm5, %v2087_v8 }
 0xbbb   : > { %3942 = vmatprep.mubr.msk.f32.mxu1 %vm4075_vm0, %v4074_v1 }
 0xbe5   : > { %v2262_v9 = vpop.f32.mrf.mxu0 }
 0xbe6   : > { %v2276_v10 = vadd.f32 %v2262_v9, %v4524_v30 }
 0xbe7   : > { %v3927_v13 = vpop.f32.mrf.mxu0 }
 0xbe8   : > { %v2279_v14 = vadd.f32 %v2276_v10, %v4258_v15 }
 0xbea   : > { %v4569_v18 = vadd.f32 %v3509_v11, %v2279_v14 }
 0xbec   : > { %v2294_v20 = vsel %vm796_vm2, %v4569_v18, 0.0 }
 0xbed   : > { %2295 = vadd.xlane.f32.xlu1 %v2294_v20 }
 0xc76   : > { %v2296_v22 = vpop.xlane.xlu1 %2295  ;;  %v2178_v24 = vpop.f32.mrf.mxu1 }
 0xc77   : > { %v2303_v25 = vmul.f32 0.03125, %v2296_v22  ;;  %3929 = vmatmul.mubr.msk.f32.gmra.mxu0 %vm969_vm4, %v2178_v24 }
 0xc78   : > { %v3919_v28 = vpop.f32.mrf.mxu1  ;;  %3931 = vmatprep.mubr.msk.f32.mxu0 %vm4075_vm0, %v4074_v1 }
 0xc79   : > { %v2306_v29 = vsub.f32 %v4569_v18, %v2303_v25 }
 0xc7a   : > { %v2183_v30 = vpop.f32.mrf.mxu1 }
 0xc7b   : > { %3932 = vmatmul.mubr.msk.f32.gmra.mxu0 %vm969_vm4, %v2183_v30  ;;  %v2309_v15 = vmul.f32 %v2306_v29, %v2306_v29 }
 0xc7c   : > { %v3922_v31 = vpop.f32.mrf.mxu1  ;;  %3967 = vmatprep.mubr.msk.f32.mxu0 %vm4075_vm0, %v4074_v1 }
 0xc7d   : > { %v2312_v32 = vsel %vm796_vm2, %v2309_v15, 0.0 }
 0xc7e   : > { %2313 = vadd.xlane.f32.xlu0 %v2312_v32 }
 0xd07   : > { %v2314_v38 = vpop.xlane.xlu0 %2313 }
 0xd08   : > { %v2321_v16 = vmul.f32 0.03125, %v2314_v38 }
 0xd0a   : > { %v2324_v17 = vadd.f32 1e-06, %v2321_v16 }
 0xd0c   : > { %4052 = vrsqrt.f32 %v2324_v17 }
 0xd19   : > { %v4053_v19 = vpop.eup %4052 }
 0xd1a   : > { %v2330_v39 = vmul.f32 %v4053_v19, %v2306_v29 }
 0xd1c   : > { %v2339_v42 = vmul.f32 %v4599_v23, %v2330_v39  ;;  %v3516_v39 = vld [vmem:[%s5246_s15] ss:$0 sm:$0xff] }
 0xd1e   : > { %v2348_v43 = vadd.f32 %v4604_v41, %v2339_v42 }
 0xd20   : > { %3943 = vmatmul.mubr.msk.f32.vlgmr.msra.gmra.mxu1 %vm796_vm2, %v2348_v43 }
 0xd21   : > { %3945 = vmatprep.mubr.msk.f32.mxu1 %vm4075_vm0, %v4074_v1 }
 0xd37   : > { %v2267_v44 = vpop.f32.mrf.mxu0 }
 0xd38   : > { %v2277_v45 = vadd.f32 %v2267_v44, %v4527_v33  ;;  %v2485_v33 = vld [vmem:[%s5245_s14 + $0x38] sm:$0xff] }
 0xd39   : > { %v3930_v46 = vpop.f32.mrf.mxu0  ;;  %3952 = vmatpush3.msra.mxu0 %v2485_v33 }
 0xd3a   : > { %v2280_v12 = vadd.f32 %v2277_v45, %v4265_v21  ;;  %3953 = vmatprep.subr.mxu0 %v4074_v1  ;;  %v2484_v21 = vld [vmem:[%s5245_s14 + $0x30] sm:$0xff] }
 0xd3b   : > { %v2272_v26 = vpop.f32.mrf.mxu0  ;;  %3954 = vmatpush3.msra.mxu0 %v2484_v21 }
 0xd3c   : > { %v2278_v47 = vadd.f32 %v2272_v26, %v4540_v40  ;;  %v2290_v48 = vadd.f32 %v3509_v11, %v2280_v12  ;;  %3955 = vmatprep.subr.mxu0 %v4074_v1  ;;  %v2482_v40 = vld [vmem:[%s5245_s14 + $0x20] sm:$0xff] }
 0xd3d   : > { %v3933_v49 = vpop.f32.mrf.mxu0 }
 0xd3e   : > { %v2281_v50 = vadd.f32 %v2278_v47, %v4272_v27  ;;  %v2297_v51 = vsel %vm796_vm2, %v2290_v48, 0.0  ;;  %v2483_v27 = vld [vmem:[%s5245_s14 + $0x28] sm:$0xff] }
 0xd3f   : > { %2298 = vadd.xlane.f32.xlu1 %v2297_v51  ;;  %3956 = vmatpush3.msra.mxu0 %v2483_v27 }
 0xd40   : > { %v2291_v52 = vadd.f32 %v3509_v11, %v2281_v50  ;;  %3957 = vmatprep.subr.mxu0 %v4074_v1 }
 0xd41   : > { %3958 = vmatpush3.msra.mxu0 %v2482_v40 }
 0xd42   : > { %v2300_v53 = vsel %vm803_vm3, %v2291_v52, 0.0  ;;  %3959 = vmatprep.subr.mxu0 %v4074_v1 }
 0xd43   : > { %2301 = vadd.xlane.f32.xlu0 %v2300_v53  ;;  %3960 = vmatpush3.msra.mxu0 %v2481_v54 }
 0xd44   : > { %3961 = vmatprep.subr.mxu0 %v4074_v1 }
 0xd45   : > { %3962 = vmatpush3.msra.mxu0 %v2480_v55 }
 0xd46   : > { %3963 = vmatprep.subr.mxu0 %v4074_v1 }
 0xd47   : > { %3964 = vmatpush3.msra.mxu0 %v2479_v56 }
 0xd48   : > { %3965 = vmatprep.subr.mxu0 %v4074_v1 }
 0xd49   : > { %3966 = vmatpush3.msra.mxu0 %v2478_v57 }
 0xdc8   : > { %v2299_v58 = vpop.xlane.xlu1 %2298 }
 0xdc9   : > { %v2304_v59 = vmul.f32 0.03125, %v2299_v58 }
 0xdcb   : > { %v2307_v60 = vsub.f32 %v2290_v48, %v2304_v59 }
 0xdcc   : > { %v2302_v61 = vpop.xlane.xlu0 %2301 }
 0xdcd   : > { %v2305_v62 = vmul.f32 0.03125, %v2302_v61  ;;  %v2310_v63 = vmul.f32 %v2307_v60, %v2307_v60 }
 0xdcf   : > { %v2308_v0 = vsub.f32 %v2291_v52, %v2305_v62  ;;  %v2315_v2 = vsel %vm796_vm2, %v2310_v63, 0.0 }
 0xdd0   : > { %2316 = vadd.xlane.f32.xlu1 %v2315_v2 }
 0xdd1   : > { %v2311_v3 = vmul.f32 %v2308_v0, %v2308_v0 }
 0xdd3   : > { %v2318_v4 = vsel %vm803_vm3, %v2311_v3, 0.0 }
 0xdd4   : > { %2319 = vadd.xlane.f32.xlu0 %v2318_v4  ;;  %v2638_v4 = vld [vmem:[%s5249_s18 + $0xd8] sm:$0xff] }
 0xdd5   : > { %2783 = vmatprep.subr.mxu0 %v2638_v4  ;;  %v2982_v4 = vld [vmem:[%s5251_s20 + $0x50] sm:$0xff] }
 0xde0   : > { %v2437_v6 = vpop.f32.mrf.mxu1 }
 0xde1   : > { %v2438_v7 = vadd.f32 %v3512_v5, %v2437_v6  ;;  %v2637_v6 = vld [vmem:[%s5249_s18 + $0xd0] sm:$0xff] }
 0xde2   : > { %v3944_v8 = vpop.f32.mrf.mxu1 }
 0xde3   : > { %v2451_v9 = vmul.f32 %v2438_v7, %v2438_v7  ;;  %v2630_v8 = vld [vmem:[%s5249_s18 + $0x98] sm:$0xff] }
 0xde5   : > { %v2454_v10 = vmul.f32 %v2451_v9, %v2438_v7  ;;  %v2628_v9 = vld [vmem:[%s5249_s18 + $0x88] sm:$0xff] }
 0xde7   : > { %v2457_v11 = vmul.f32 0.044715, %v2454_v10  ;;  %v2629_v10 = vld [vmem:[%s5249_s18 + $0x90] sm:$0xff] }
 0xde9   : > { %v2460_v13 = vadd.f32 %v2457_v11, %v2438_v7  ;;  %v2627_v11 = vld [vmem:[%s5249_s18 + $0x80] sm:$0xff] }
 0xdeb   : > { %v2463_v14 = vmul.f32 0.7978846, %v2460_v13  ;;  %v2622_v13 = vld [vmem:[%s5249_s18 + $0x58] sm:$0xff] }
 0xded   : > { %4054 = vtanh.f32 %v2463_v14  ;;  %v2620_v14 = vld [vmem:[%s5249_s18 + $0x48] sm:$0xff] }
 0xdfa   : > { %v4055_v20 = vpop.eup %4054 }
 0xdfb   : > { %v2469_v22 = vadd.f32 1.0, %v4055_v20  ;;  %v2621_v20 = vld [vmem:[%s5249_s18 + $0x50] sm:$0xff] }
 0xdfd   : > { %v2472_v24 = vmul.f32 0.5, %v2469_v22  ;;  %v2619_v22 = vld [vmem:[%s5249_s18 + $0x40] sm:$0xff] }
 0xdff   : > { %v2475_v25 = vmul.f32 %v2472_v24, %v2438_v7  ;;  %v2635_v7 = vld [vmem:[%s5249_s18 + $0xc0] sm:$0xff]  ;;  %v2612_v24 = vld [vmem:[%s5249_s18 + $0x8] sm:$0xff] }
 0xe01   : > { %3968 = vmatmul.mubr.msk.f32.vlgmr.msra.gmra.mxu0 %vm2493_vm8, %v2475_v25  ;;  %v2614_v25 = vld [vmem:[%s5249_s18 + $0x18] sm:$0xff] }
 0xe02   : > { %3970 = vmatprep.mubr.msk.f32.mxu0 %vm4075_vm0, %v4074_v1  ;;  %2784 = vmatpush1.msra.mxu0 %v2637_v6  ;;  %v2997_v6 = vld [vmem:[%s5251_s20 + $0xc8] sm:$0xff] }
 0xe03   : > { %2785 = vmatprep.subr.mxu0 %v2630_v8  ;;  %v2981_v8 = vld [vmem:[%s5251_s20 + $0x48] sm:$0xff] }
 0xe04   : > { %2786 = vmatpush1.msra.mxu0 %v2629_v10  ;;  %v2996_v10 = vld [vmem:[%s5251_s20 + $0xc0] sm:$0xff] }
 0xe05   : > { %2787 = vmatprep.subr.mxu0 %v2622_v13  ;;  %v2980_v13 = vld [vmem:[%s5251_s20 + $0x40] sm:$0xff] }
 0xe06   : > { %2788 = vmatpush1.msra.mxu0 %v2621_v20  ;;  %v2995_v20 = vld [vmem:[%s5251_s20 + $0xb8] sm:$0xff] }
 0xe07   : > { %2789 = vmatprep.subr.mxu0 %v2614_v25  ;;  %v3011_v25 = vld [vmem:[%s5251_s20 + $0x138] sm:$0xff] }
 0xe59   : > { %v2317_v28 = vpop.xlane.xlu1 %2316 }
 0xe5a   : > { %v2322_v29 = vmul.f32 0.03125, %v2317_v28  ;;  %v2611_v28 = vld [vmem:[%s5249_s18] sm:$0xff] }
 0xe5c   : > { %v2325_v30 = vadd.f32 1e-06, %v2322_v29  ;;  %v2613_v29 = vld [vmem:[%s5249_s18 + $0x10] sm:$0xff] }
 0xe5d   : > { %v2320_v15 = vpop.xlane.xlu0 %2319  ;;  %2790 = vmatpush1.msra.mxu0 %v2613_v29  ;;  %v2994_v29 = vld [vmem:[%s5251_s20 + $0xb0] sm:$0xff] }
 0xe5e   : > { %4056 = vrsqrt.f32 %v2325_v30  ;;  %v2323_v31 = vmul.f32 0.03125, %v2320_v15  ;;  %v2640_v30 = vld [vmem:[%s5249_s18 + $0xe8] sm:$0xff]  ;;  %v2642_v15 = vld [vmem:[%s5249_s18 + $0xf8] sm:$0xff] }
 0xe5f   : > { %2925 = vmatprep.subr.mxu0 %v2642_v15  ;;  %v2978_v15 = vld [vmem:[%s5251_s20 + $0x30] sm:$0xff] }
 0xe60   : > { %v2326_v32 = vadd.f32 1e-06, %v2323_v31 }
 0xe62   : > { %4058 = vrsqrt.f32 %v2326_v32 }
 0xe6b   : > { %v4057_v34 = vpop.eup %4056 }
 0xe6c   : > { %v2331_v35 = vmul.f32 %v4057_v34, %v2307_v60 }
 0xe6e   : > { %v2340_v36 = vmul.f32 %v4599_v23, %v2331_v35 }
 0xe6f   : > { %v4059_v37 = vpop.eup %4058 }
 0xe70   : > { %v2349_v38 = vadd.f32 %v4604_v41, %v2340_v36  ;;  %v2332_v16 = vmul.f32 %v4059_v37, %v2308_v0  ;;  %v3520_v36 = vld [vmem:[%s5247_s16] ss:$0 sm:$0xff] }
 0xe72   : > { %3946 = vmatmul.mubr.msk.f32.gmra.mxu1 %vm796_vm2, %v2349_v38  ;;  %v2341_v17 = vmul.f32 %v4599_v23, %v2332_v16  ;;  %v3521_v38 = vld [vmem:[%s5248_s17] ss:$0 sm:$0xff] }
 0xe73   : > { %3948 = vmatprep.mubr.msk.f32.mxu1 %vm4075_vm0, %v4074_v1 }
 0xe74   : > { %v2350_v19 = vadd.f32 %v4604_v41, %v2341_v17 }
 0xe76   : > { %3949 = vmatmul.mubr.msk.f32.gmra.mxu1 %vm796_vm2, %v2350_v19  ;;  %v2639_v19 = vld [vmem:[%s5249_s18 + $0xe0] sm:$0xff] }
 0xe77   : > { %2752 = vmatprep.mubr.f32.mxu1 %v4074_v1 }
 0xec1   : > { %v2569_v42 = vpop.f32.mrf.mxu0 }
 0xec2   : > { %v2570_v43 = vadd.f32 %v3516_v39, %v2569_v42  ;;  %v2641_v39 = vld [vmem:[%s5249_s18 + $0xf0] sm:$0xff]  ;;  %v2632_v42 = vld [vmem:[%s5249_s18 + $0xa8] sm:$0xff] }
 0xec3   : > { %v3969_v44 = vpop.f32.mrf.mxu0 }
 0xec4   : > { %v2581_v45 = vadd.f32 %v2570_v43, %v4569_v18  ;;  %v2634_v43 = vld [vmem:[%s5249_s18 + $0xb8] sm:$0xff]  ;;  %v2631_v44 = vld [vmem:[%s5249_s18 + $0xa0] sm:$0xff] }
 0xec6   : > { %v2584_v23 = vsel %vm796_vm2, %v2581_v45, 0.0 }
 0xec7   : > { %2585 = vadd.xlane.f32.xlu1 %v2584_v23  ;;  %v2624_v23 = vld [vmem:[%s5249_s18 + $0x68] sm:$0xff] }
 0xf32   : > { %v2442_v46 = vpop.f32.mrf.mxu1 }
 0xf33   : > { %v2443_v12 = vadd.f32 %v3512_v5, %v2442_v46  ;;  %v2626_v46 = vld [vmem:[%s5249_s18 + $0x78] sm:$0xff] }
 0xf34   : > { %v3947_v26 = vpop.f32.mrf.mxu1 }
 0xf35   : > { %v2452_v41 = vmul.f32 %v2443_v12, %v2443_v12  ;;  %v2625_v26 = vld [vmem:[%s5249_s18 + $0x70] sm:$0xff] }
 0xf36   : > { %v2447_v47 = vpop.f32.mrf.mxu1 }
 0xf37   : > { %v2455_v48 = vmul.f32 %v2452_v41, %v2443_v12  ;;  %v2448_v49 = vadd.f32 %v3512_v5, %v2447_v47  ;;  %v2636_v5 = vld [vmem:[%s5249_s18 + $0xc8] sm:$0xff]  ;;  %v2618_v47 = vld [vmem:[%s5249_s18 + $0x38] sm:$0xff] }
 0xf38   : > { %v3950_v50 = vpop.f32.mrf.mxu1  ;;  %2712 = vmatprep.subr.mxu1 %v2636_v5  ;;  %v2616_v41 = vld [vmem:[%s5249_s18 + $0x28] sm:$0xff]  ;;  %v3014_v5 = vld [vmem:[%s5251_s20 + $0x150] sm:$0xff] }
 0xf39   : > { %v2458_v51 = vmul.f32 0.044715, %v2455_v48  ;;  %v2453_v52 = vmul.f32 %v2448_v49, %v2448_v49  ;;  %2713 = vmatpush1.msra.mxu1 %v2635_v7  ;;  %v2615_v48 = vld [vmem:[%s5249_s18 + $0x20] sm:$0xff]  ;;  %v3003_v50 = vld [vmem:[%s5251_s20 + $0xf8] sm:$0xff]  ;;  %v3029_v7 = vld [vmem:[%s5251_s20 + $0x1c8] sm:$0xff] }
 0xf3a   : > { %2714 = vmatprep.subr.mxu1 %v2628_v9  ;;  %v3013_v9 = vld [vmem:[%s5251_s20 + $0x148] sm:$0xff] }
 0xf3b   : > { %v2461_v53 = vadd.f32 %v2458_v51, %v2443_v12  ;;  %v2456_v33 = vmul.f32 %v2453_v52, %v2448_v49  ;;  %2715 = vmatpush1.msra.mxu1 %v2627_v11  ;;  %v3035_v51 = vld [vmem:[%s5251_s20 + $0x1f8] sm:$0xff]  ;;  %v3028_v11 = vld [vmem:[%s5251_s20 + $0x1c0] sm:$0xff] }
 0xf3c   : > { %2716 = vmatprep.subr.mxu1 %v2620_v14  ;;  %v2987_v52 = vld [vmem:[%s5251_s20 + $0x78] sm:$0xff]  ;;  %v3012_v14 = vld [vmem:[%s5251_s20 + $0x140] sm:$0xff] }
 0xf3d   : > { %v2464_v21 = vmul.f32 0.7978846, %v2461_v53  ;;  %v2459_v27 = vmul.f32 0.044715, %v2456_v33  ;;  %2717 = vmatpush1.msra.mxu1 %v2619_v22  ;;  %v3019_v53 = vld [vmem:[%s5251_s20 + $0x178] sm:$0xff]  ;;  %v3002_v33 = vld [vmem:[%s5251_s20 + $0xf0] sm:$0xff] }
 0xf3e   : > { %2718 = vmatprep.subr.mxu1 %v2612_v24  ;;  %v3027_v22 = vld [vmem:[%s5251_s20 + $0x1b8] sm:$0xff] }
 0xf3f   : > { %4060 = vtanh.f32 %v2464_v21  ;;  %v2462_v40 = vadd.f32 %v2459_v27, %v2448_v49  ;;  %2719 = vmatpush1.msra.mxu1 %v2611_v28  ;;  %v3034_v21 = vld [vmem:[%s5251_s20 + $0x1f0] sm:$0xff]  ;;  %v2979_v24 = vld [vmem:[%s5251_s20 + $0x38] sm:$0xff] }
 0xf40   : > { %2854 = vmatprep.subr.mxu1 %v2640_v30  ;;  %v2986_v27 = vld [vmem:[%s5251_s20 + $0x70] sm:$0xff] }
 0xf41   : > { %v2465_v18 = vmul.f32 0.7978846, %v2462_v40  ;;  %v3018_v40 = vld [vmem:[%s5251_s20 + $0x170] sm:$0xff] }
 0xf42   : > { %v3026_v30 = vld [vmem:[%s5251_s20 + $0x1b0] sm:$0xff] }
 0xf43   : > { %4062 = vtanh.f32 %v2465_v18  ;;  %v3001_v18 = vld [vmem:[%s5251_s20 + $0xe8] sm:$0xff] }
 0xf4c   : > { %v4061_v54 = vpop.eup %4060 }
 0xf4d   : > { %v2470_v55 = vadd.f32 1.0, %v4061_v54  ;;  %v3033_v54 = vld [vmem:[%s5251_s20 + $0x1e8] sm:$0xff] }
 0xf4f   : > { %v2473_v56 = vmul.f32 0.5, %v2470_v55  ;;  %v2985_v55 = vld [vmem:[%s5251_s20 + $0x68] sm:$0xff] }
 0xf50   : > { %v4063_v57 = vpop.eup %4062  ;;  %v2586_v58 = vpop.xlane.xlu1 %2585 }
 0xf51   : > { %v2587_v59 = vmul.f32 0.03125, %v2586_v58  ;;  %v2476_v60 = vmul.f32 %v2473_v56, %v2443_v12  ;;  %v2471_v61 = vadd.f32 1.0, %v4063_v57  ;;  %v2623_v12 = vld [vmem:[%s5249_s18 + $0x60] sm:$0xff]  ;;  %v3017_v56 = vld [vmem:[%s5251_s20 + $0x168] sm:$0xff] }
 0xf52   : > { %v3000_v57 = vld [vmem:[%s5251_s20 + $0xe0] sm:$0xff] }
 0xf53   : > { %v2588_v62 = vsub.f32 %v2581_v45, %v2587_v59  ;;  %3971 = vmatmul.mubr.msk.f32.gmra.mxu0 %vm2493_vm8, %v2476_v60  ;;  %v2474_v63 = vmul.f32 0.5, %v2471_v61  ;;  %v2633_v45 = vld [vmem:[%s5249_s18 + $0xb0] sm:$0xff]  ;;  %v3032_v58 = vld [vmem:[%s5251_s20 + $0x1e0] sm:$0xff]  ;;  %v2999_v61 = vld [vmem:[%s5251_s20 + $0xd8] sm:$0xff] }
 0xf54   : > { %3973 = vmatprep.mubr.msk.f32.mxu0 %vm4075_vm0, %v4074_v1  ;;  %v2984_v59 = vld [vmem:[%s5251_s20 + $0x60] sm:$0xff] }
 0xf55   : > { %v2477_v0 = vmul.f32 %v2474_v63, %v2448_v49  ;;  %v2589_v2 = vmul.f32 %v2588_v62, %v2588_v62  ;;  %v2617_v49 = vld [vmem:[%s5249_s18 + $0x30] sm:$0xff]  ;;  %v3016_v60 = vld [vmem:[%s5251_s20 + $0x160] sm:$0xff]  ;;  %v2983_v63 = vld [vmem:[%s5251_s20 + $0x58] sm:$0xff] }
 0xf57   : > { %3974 = vmatmul.mubr.msk.f32.gmra.mxu0 %vm2493_vm8, %v2477_v0  ;;  %v2590_v3 = vsel %vm796_vm2, %v2589_v2, 0.0  ;;  %v3015_v0 = vld [vmem:[%s5251_s20 + $0x158] sm:$0xff]  ;;  %v2998_v2 = vld [vmem:[%s5251_s20 + $0xd0] sm:$0xff] }
 0xf58   : > { %2591 = vadd.xlane.f32.xlu0 %v2590_v3  ;;  %2823 = vmatprep.mubr.f32.mxu0 %v4074_v1  ;;  %v3030_v3 = vld [vmem:[%s5251_s20 + $0x1d0] sm:$0xff] }
 0xfe1   : > { %v2592_v31 = vpop.xlane.xlu0 %2591 }
 0xfe2   : > { %v2593_v32 = vmul.f32 0.03125, %v2592_v31  ;;  %v3010_v31 = vld [vmem:[%s5251_s20 + $0x130] sm:$0xff] }
 0xfe4   : > { %v2594_v34 = vadd.f32 1e-06, %v2593_v32 }
 0xfe6   : > { %4064 = vrsqrt.f32 %v2594_v34  ;;  %v2993_v34 = vld [vmem:[%s5251_s20 + $0xa8] sm:$0xff] }
 0xff3   : > { %v4065_v35 = vpop.eup %4064 }
 0xff4   : > { %v2596_v37 = vmul.f32 %v4065_v35, %v2588_v62  ;;  %v3031_v62 = vld [vmem:[%s5251_s20 + $0x1d8] sm:$0xff]  ;;  %v3025_v35 = vld [vmem:[%s5251_s20 + $0x1a8] sm:$0xff] }
 0xff6   : > { %v2603_v16 = vmul.f32 %v3520_v36, %v2596_v37  ;;  %v2977_v36 = vld [vmem:[%s5251_s20 + $0x28] sm:$0xff] }
 0xff7   : > { %v3009_v37 = vld [vmem:[%s5251_s20 + $0x128] sm:$0xff] }
 0xff8   : > { %v2610_v17 = vadd.f32 %v3521_v38, %v2603_v16  ;;  %v2992_v16 = vld [vmem:[%s5251_s20 + $0xa0] sm:$0xff] }
 0xffa   : > { %3522 = vmatmul.mubr.msk.f32.vlgmr.msra.gmra.mxu1 %vm796_vm2, %v2610_v17  ;;  %3523 = vmatmul.mubr.msk.f32.vlgmr.msra.gmra.mxu0 %vm796_vm2, %v2610_v17 }
 0xffb   : > { %2855 = vmatpush1.msra.mxu1 %v2639_v19  ;;  %2926 = vmatpush1.msra.mxu0 %v2641_v39  ;;  %v2976_v19 = vld [vmem:[%s5251_s20 + $0x20] sm:$0xff] }
 0xffc   : > { %2856 = vmatprep.subr.mxu1 %v2632_v42  ;;  %2927 = vmatprep.subr.mxu0 %v2634_v43  ;;  %v3008_v39 = vld [vmem:[%s5251_s20 + $0x120] sm:$0xff]  ;;  %v2991_v43 = vld [vmem:[%s5251_s20 + $0x98] sm:$0xff] }
 0xffd   : > { %2857 = vmatpush1.msra.mxu1 %v2631_v44  ;;  %2928 = vmatpush1.msra.mxu0 %v2633_v45  ;;  %v3023_v44 = vld [vmem:[%s5251_s20 + $0x198] sm:$0xff] }
 0xffe   : > { %2858 = vmatprep.subr.mxu1 %v2624_v23  ;;  %2929 = vmatprep.subr.mxu0 %v2626_v46  ;;  %v2975_v45 = vld [vmem:[%s5251_s20 + $0x18] sm:$0xff]  ;;  %v2990_v46 = vld [vmem:[%s5251_s20 + $0x90] sm:$0xff] }
 0xfff   : > { %2859 = vmatpush1.msra.mxu1 %v2623_v12  ;;  %2930 = vmatpush1.msra.mxu0 %v2625_v26  ;;  %v3007_v23 = vld [vmem:[%s5251_s20 + $0x118] sm:$0xff]  ;;  %v3022_v12 = vld [vmem:[%s5251_s20 + $0x190] sm:$0xff] }
0x1000   : > { %2860 = vmatprep.subr.mxu1 %v2616_v41  ;;  %2931 = vmatprep.subr.mxu0 %v2618_v47  ;;  %v2974_v26 = vld [vmem:[%s5251_s20 + $0x10] sm:$0xff]  ;;  %v2989_v47 = vld [vmem:[%s5251_s20 + $0x88] sm:$0xff] }
0x1001   : > { %2861 = vmatpush1.msra.mxu1 %v2615_v48  ;;  %2894 = vmatprep.mubr.f32.mxu1 %v4074_v1  ;;  %v3006_v41 = vld [vmem:[%s5251_s20 + $0x110] sm:$0xff]  ;;  %v3021_v48 = vld [vmem:[%s5251_s20 + $0x188] sm:$0xff] }
0x1002   : > { %2932 = vmatpush1.msra.mxu0 %v2617_v49  ;;  %2965 = vmatprep.mubr.f32.mxu0 %v4074_v1  ;;  %v2973_v49 = vld [vmem:[%s5251_s20 + $0x8] sm:$0xff] }
0x1003   : > { %3524 = vmatmul.mubr.msk.f32.vlgmr.msra.gmra.mxu1 %vm796_vm2, %v2610_v17  ;;  %3525 = vmatmul.mubr.msk.f32.vlgmr.msra.gmra.mxu0 %vm796_vm2, %v2610_v17  ;;  %v3024_v17 = vld [vmem:[%s5251_s20 + $0x1a0] sm:$0xff] }
0x1004   : > { %3627 = vmatprep.subr.mxu1 %v3003_v50  ;;  %3662 = vmatprep.subr.mxu0 %v3035_v51  ;;  %v3005_v50 = vld [vmem:[%s5251_s20 + $0x108] sm:$0xff]  ;;  %v2988_v51 = vld [vmem:[%s5251_s20 + $0x80] sm:$0xff] }
0x1005   : > { %3628 = vmatpush3.msra.mxu1 %v2987_v52  ;;  %3663 = vmatpush3.msra.mxu0 %v3019_v53  ;;  %v3020_v52 = vld [vmem:[%s5251_s20 + $0x180] sm:$0xff] }
0x1006   : > { %3629 = vmatprep.subr.mxu1 %v3002_v33  ;;  %3664 = vmatprep.subr.mxu0 %v3034_v21  ;;  %v2972_v53 = vld [vmem:[%s5251_s20] sm:$0xff]  ;;  %v3067_v21 = vld [vmem:[%s5251_s20 + $0x2f8] sm:$0xff] }
0x1007   : > { %3630 = vmatpush3.msra.mxu1 %v2986_v27  ;;  %3665 = vmatpush3.msra.mxu0 %v3018_v40  ;;  %v3004_v33 = vld [vmem:[%s5251_s20 + $0x100] sm:$0xff]  ;;  %v2645_v27 = vlaneseq }
0x1008   : > { %3631 = vmatprep.subr.mxu1 %v3001_v18  ;;  %3666 = vmatprep.subr.mxu0 %v3033_v54 }
0x1009   : > { %3632 = vmatpush3.msra.mxu1 %v2985_v55  ;;  %3667 = vmatpush3.msra.mxu0 %v3017_v56  ;;  %v4980_v40 = vshrl.u32 %v2645_v27, 7  ;;  %v3072_v27 = vld [vmem:[%s5251_s20 + $0x320] sm:$0xff] }
0x100a   : > { %3633 = vmatprep.subr.mxu1 %v3000_v57  ;;  %3668 = vmatprep.subr.mxu0 %v3032_v58  ;;  %v4989_v57 = vld [vmem:[%s5250_s19] sm:$0xff] }
0x100b   : > { %3634 = vmatpush3.msra.mxu1 %v2984_v59  ;;  %3669 = vmatpush3.msra.mxu0 %v3016_v60  ;;  %v2651_v18 = vsub.s32 1, %v4980_v40  ;;  %v2659_v54 = vsub.s32 3, %v4980_v40  ;;  %v2647_v55 = vsub.s32 0, %v4980_v40  ;;  %v2655_v56 = vsub.s32 2, %v4980_v40 }
0x100c   : > { %3635 = vmatprep.subr.mxu1 %v2999_v61  ;;  %3670 = vmatprep.subr.mxu0 %v3031_v62 }
0x100d   : > { %3636 = vmatpush3.msra.mxu1 %v2983_v63  ;;  %3671 = vmatpush3.msra.mxu0 %v3015_v0  ;;  %v2652_v58 = vrot.slane %v4989_v57, %v2651_v18  ;;  %v2660_v59 = vrot.slane %v4989_v57, %v2659_v54  ;;  %v2648_v60 = vrot.slane %v4989_v57, %v2647_v55  ;;  %v3055_v18 = vld [vmem:[%s5251_s20 + $0x298] sm:$0xff]  ;;  %v2663_v54 = vsub.s32 4, %v4980_v40 }
0x100e   : > { %3637 = vmatprep.subr.mxu1 %v2998_v2  ;;  %3672 = vmatprep.subr.mxu0 %v3030_v3  ;;  %v2656_v62 = vrot.slane %v4989_v57, %v2655_v56  ;;  %v3039_v56 = vld [vmem:[%s5251_s20 + $0x218] sm:$0xff] }
0x100f   : > { %3638 = vmatpush3.msra.mxu1 %v2982_v4  ;;  %3673 = vmatpush3.msra.mxu0 %v3014_v5 }
0x1010   : > { %3639 = vmatprep.subr.mxu1 %v2997_v6  ;;  %3674 = vmatprep.subr.mxu0 %v3029_v7  ;;  %v3051_v7 = vld [vmem:[%s5251_s20 + $0x278] sm:$0xff] }
0x1011   : > { %3640 = vmatpush3.msra.mxu1 %v2981_v8  ;;  %3675 = vmatpush3.msra.mxu0 %v3013_v9  ;;  %v3083_v8 = vld [vmem:[%s5251_s20 + $0x378] sm:$0xff]  ;;  %v2667_v9 = vsub.s32 5, %v4980_v40 }
0x1012   : > { %3641 = vmatprep.subr.mxu1 %v2996_v10  ;;  %3676 = vmatprep.subr.mxu0 %v3028_v11  ;;  %v2675_v10 = vsub.s32 7, %v4980_v40  ;;  %v3066_v11 = vld [vmem:[%s5251_s20 + $0x2f0] sm:$0xff] }
0x1013   : > { %v2574_v28 = vpop.f32.mrf.mxu0  ;;  %3642 = vmatpush3.msra.mxu1 %v2980_v13  ;;  %3677 = vmatpush3.msra.mxu0 %v3012_v14  ;;  %v3050_v13 = vld [vmem:[%s5251_s20 + $0x270] sm:$0xff] }
0x1014   : > { %3643 = vmatprep.subr.mxu1 %v2995_v20  ;;  %3678 = vmatprep.subr.mxu0 %v3027_v22  ;;  %v3082_v14 = vld [vmem:[%s5251_s20 + $0x370] sm:$0xff]  ;;  %v3065_v20 = vld [vmem:[%s5251_s20 + $0x2e8] sm:$0xff]  ;;  %v2668_v22 = vrot.slane %v4989_v57, %v2667_v9 }
0x1015   : > { %v3972_v32 = vpop.f32.mrf.mxu0  ;;  %3644 = vmatpush3.msra.mxu1 %v2979_v24  ;;  %3679 = vmatpush3.msra.mxu0 %v3011_v25  ;;  %v2676_v24 = vrot.slane %v4989_v57, %v2675_v10  ;;  %v3049_v25 = vld [vmem:[%s5251_s20 + $0x268] sm:$0xff]  ;;  %v3094_v9 = vld [vmem:[%s5251_s20 + $0x3d0] sm:$0xff] }
0x1016   : > { %3645 = vmatprep.subr.mxu1 %v2994_v29  ;;  %3680 = vmatprep.subr.mxu0 %v3026_v30  ;;  %v3081_v28 = vld [vmem:[%s5251_s20 + $0x368] sm:$0xff]  ;;  %v3080_v32 = vld [vmem:[%s5251_s20 + $0x360] sm:$0xff] }
0x1017   : > { %v2578_v38 = vpop.f32.mrf.mxu0  ;;  %3646 = vmatpush3.msra.mxu1 %v2978_v15  ;;  %3681 = vmatpush3.msra.mxu0 %v3010_v31  ;;  %v3064_v15 = vld [vmem:[%s5251_s20 + $0x2e0] sm:$0xff]  ;;  %v3093_v10 = vld [vmem:[%s5251_s20 + $0x3c8] sm:$0xff] }
0x1018   : > { %3647 = vmatprep.subr.mxu1 %v2993_v34  ;;  %3682 = vmatprep.subr.mxu0 %v3025_v35  ;;  %v3048_v31 = vld [vmem:[%s5251_s20 + $0x260] sm:$0xff]  ;;  %v3063_v38 = vld [vmem:[%s5251_s20 + $0x2d8] sm:$0xff] }
0x1019   : > { %v3975_v42 = vpop.f32.mrf.mxu0  ;;  %3648 = vmatpush3.msra.mxu1 %v2977_v36  ;;  %3683 = vmatpush3.msra.mxu0 %v3009_v37 }
0x101a   : > { %3649 = vmatprep.subr.mxu1 %v2992_v16  ;;  %3684 = vmatprep.subr.mxu0 %v3024_v17  ;;  %v3047_v16 = vld [vmem:[%s5251_s20 + $0x258] sm:$0xff]  ;;  %v3078_v42 = vld [vmem:[%s5251_s20 + $0x350] sm:$0xff] }
0x101b   : > { %3650 = vmatpush3.msra.mxu1 %v2976_v19  ;;  %3685 = vmatpush3.msra.mxu0 %v3008_v39  ;;  %v3079_v17 = vld [vmem:[%s5251_s20 + $0x358] sm:$0xff]  ;;  %v3062_v19 = vld [vmem:[%s5251_s20 + $0x2d0] sm:$0xff] }
0x101c   : > { %3651 = vmatprep.subr.mxu1 %v2991_v43  ;;  %3686 = vmatprep.subr.mxu0 %v3023_v44  ;;  %v3046_v39 = vld [vmem:[%s5251_s20 + $0x250] sm:$0xff]  ;;  %v3061_v43 = vld [vmem:[%s5251_s20 + $0x2c8] sm:$0xff] }
0x101d   : > { %3652 = vmatpush3.msra.mxu1 %v2975_v45  ;;  %3687 = vmatpush3.msra.mxu0 %v3007_v23  ;;  %v3045_v44 = vld [vmem:[%s5251_s20 + $0x248] sm:$0xff]  ;;  %v3060_v23 = vld [vmem:[%s5251_s20 + $0x2c0] sm:$0xff] }
0x101e   : > { %3653 = vmatprep.subr.mxu1 %v2990_v46  ;;  %3688 = vmatprep.subr.mxu0 %v3022_v12  ;;  %v3077_v45 = vld [vmem:[%s5251_s20 + $0x348] sm:$0xff]  ;;  %v3044_v46 = vld [vmem:[%s5251_s20 + $0x240] sm:$0xff] }
0x101f   : > { %3654 = vmatpush3.msra.mxu1 %v2974_v26  ;;  %3689 = vmatpush3.msra.mxu0 %v3006_v41  ;;  %v3076_v12 = vld [vmem:[%s5251_s20 + $0x340] sm:$0xff]  ;;  %v3059_v26 = vld [vmem:[%s5251_s20 + $0x2b8] sm:$0xff] }
0x1020   : > { %3655 = vmatprep.subr.mxu1 %v2989_v47  ;;  %3690 = vmatprep.subr.mxu0 %v3021_v48  ;;  %v3043_v41 = vld [vmem:[%s5251_s20 + $0x238] sm:$0xff]  ;;  %v3058_v48 = vld [vmem:[%s5251_s20 + $0x2b0] sm:$0xff] }
0x1021   : > { %3656 = vmatpush3.msra.mxu1 %v2973_v49  ;;  %3691 = vmatpush3.msra.mxu0 %v3005_v50  ;;  %v3075_v47 = vld [vmem:[%s5251_s20 + $0x338] sm:$0xff]  ;;  %v3042_v49 = vld [vmem:[%s5251_s20 + $0x230] sm:$0xff] }
0x1022   : > { %3657 = vmatprep.subr.mxu1 %v2988_v51  ;;  %3692 = vmatprep.subr.mxu0 %v3020_v52  ;;  %v3074_v50 = vld [vmem:[%s5251_s20 + $0x330] sm:$0xff]  ;;  %v3057_v51 = vld [vmem:[%s5251_s20 + $0x2a8] sm:$0xff] }
0x1023   : > { %3658 = vmatpush3.msra.mxu1 %v2972_v53  ;;  %3693 = vmatpush3.msra.mxu0 %v3004_v33  ;;  %v3041_v52 = vld [vmem:[%s5251_s20 + $0x228] sm:$0xff]  ;;  %v3056_v33 = vld [vmem:[%s5251_s20 + $0x2a0] sm:$0xff] }
0x1024   : > { %3697 = vmatprep.subr.mxu1 %v3067_v21  ;;  %3312 = vmatprep.subr.mxu0 %v4074_v1  ;;  %v3073_v53 = vld [vmem:[%s5251_s20 + $0x328] sm:$0xff]  ;;  %v3040_v21 = vld [vmem:[%s5251_s20 + $0x220] sm:$0xff] }
0x10ba   : > { %v2754_v61 = vpop.f32.mrf.mxu1  ;;  %v2825_v63 = vpop.f32.mrf.mxu0 }
0x10bb   : > { %v2755_v5 = vadd.f32 %v2754_v61, %v2648_v60  ;;  %v2826_v6 = vadd.f32 %v2825_v63, %v2656_v62  ;;  %v3038_v60 = vld [vmem:[%s5251_s20 + $0x210] sm:$0xff]  ;;  %v3053_v62 = vld [vmem:[%s5251_s20 + $0x288] sm:$0xff]  ;;  %v2664_v63 = vrot.slane %v4989_v57, %v2663_v54 }
0x10bc   : > { %v2756_v0 = vpop.f32.mrf.mxu1  ;;  %v2827_v2 = vpop.f32.mrf.mxu0  ;;  %v3070_v61 = vld [vmem:[%s5251_s20 + $0x310] sm:$0xff] }
0x10bd   : > { %v2757_v3 = vadd.f32 %v2756_v0, %v2652_v58  ;;  %v2828_v4 = vadd.f32 %v2827_v2, %v2660_v59  ;;  %v3071_v58 = vld [vmem:[%s5251_s20 + $0x318] sm:$0xff]  ;;  %v3054_v59 = vld [vmem:[%s5251_s20 + $0x290] sm:$0xff]  ;;  %v3037_v0 = vld [vmem:[%s5251_s20 + $0x208] sm:$0xff] }
0x10be   : > { %v3069_v2 = vld [vmem:[%s5251_s20 + $0x308] sm:$0xff] }
0x10bf   : > { %3166 = vmatprep.mubr.f32.mxu1 %v2757_v3  ;;  %3236 = vmatprep.mubr.f32.mxu0 %v2828_v4  ;;  %v3052_v3 = vld [vmem:[%s5251_s20 + $0x280] sm:$0xff] }
0x10c0   : > { %3167 = vmatmul.mubr.f32.vlgmr.msra.gmra.mxu1 %v2755_v5  ;;  %3237 = vmatmul.mubr.f32.vlgmr.msra.gmra.mxu0 %v2826_v6  ;;  %v3036_v4 = vld [vmem:[%s5251_s20 + $0x200] sm:$0xff] }
0x10c1   : > { %3698 = vmatpush3.msra.mxu1 %v3051_v7  ;;  %3313 = vmatpush1.msra.mxu0 %v3083_v8  ;;  %v3068_v5 = vld [vmem:[%s5251_s20 + $0x300] sm:$0xff]  ;;  %v3095_v8 = vld [vmem:[%s5251_s20 + $0x3d8] sm:$0xff] }
0x10c2   : > { %3699 = vmatprep.subr.mxu1 %v3066_v11  ;;  %3314 = vmatprep.subr.mxu0 %v4074_v1  ;;  %v3096_v7 = vld [vmem:[%s5251_s20 + $0x3e0] sm:$0xff] }
0x10c3   : > { %v5026_v29 = vpop.f32.mrf.mxu1  ;;  %v5028_v30 = vpop.f32.mrf.mxu0  ;;  %3700 = vmatpush3.msra.mxu1 %v3050_v13  ;;  %3315 = vmatpush1.msra.mxu0 %v3082_v14  ;;  %v3092_v11 = vld [vmem:[%s5251_s20 + $0x3c0] sm:$0xff]  ;;  %v3091_v13 = vld [vmem:[%s5251_s20 + $0x3b8] sm:$0xff]  ;;  %v3090_v14 = vld [vmem:[%s5251_s20 + $0x3b0] sm:$0xff] }
0x10c4   : > { %3701 = vmatprep.subr.mxu1 %v3065_v20  ;;  %3316 = vmatprep.subr.mxu0 %v4074_v1  ;;  %v2897_v6 = vadd.f32 %v5026_v29, %v2664_v63  ;;  %v3089_v20 = vld [vmem:[%s5251_s20 + $0x3a8] sm:$0xff] }
0x10c5   : > { %v2898_v34 = vpop.f32.mrf.mxu1  ;;  %v2969_v35 = vpop.f32.mrf.mxu0  ;;  %3702 = vmatpush3.msra.mxu1 %v3049_v25  ;;  %3317 = vmatpush1.msra.mxu0 %v3081_v28  ;;  %v3087_v25 = vld [vmem:[%s5251_s20 + $0x398] sm:$0xff]  ;;  %v3086_v28 = vld [vmem:[%s5251_s20 + $0x390] sm:$0xff] }
0x10c6   : > { %v2899_v36 = vadd.f32 %v2898_v34, %v2668_v22  ;;  %v2970_v37 = vadd.f32 %v2969_v35, %v2676_v24  ;;  %3703 = vmatprep.subr.mxu1 %v3064_v15  ;;  %3318 = vmatprep.subr.mxu0 %v4074_v1  ;;  %v3088_v22 = vld [vmem:[%s5251_s20 + $0x3a0] sm:$0xff]  ;;  %v2671_v24 = vsub.s32 6, %v4980_v40  ;;  %v3085_v15 = vld [vmem:[%s5251_s20 + $0x388] sm:$0xff] }
0x10c7   : > { %3704 = vmatpush3.msra.mxu1 %v3048_v31  ;;  %3319 = vmatpush1.msra.mxu0 %v3080_v32  ;;  %v3084_v31 = vld [vmem:[%s5251_s20 + $0x380] sm:$0xff] }
0x10c8   : > { %3306 = vmatprep.mubr.f32.mxu1 %v2899_v36  ;;  %3526 = vmatprep.mubr.msk.f32.mxu0 %vm3098_vm9, %v2970_v37  ;;  %v2672_v29 = vrot.slane %v4989_v57, %v2671_v24 }
0x10c9   : > { %3705 = vmatprep.subr.mxu1 %v3063_v38  ;;  %3320 = vmatprep.subr.mxu0 %v4074_v1  ;;  %v3097_v38 = vld [vmem:[%s5252_s21] sm:$0x1] }
0x10ca   : > { %3706 = vmatpush3.msra.mxu1 %v3047_v16  ;;  %3321 = vmatpush1.msra.mxu0 %v3079_v17  ;;  %v2968_v32 = vadd.f32 %v5028_v30, %v2672_v29 }
0x10cb   : > { %3707 = vmatprep.subr.mxu1 %v3062_v19  ;;  %3322 = vmatprep.subr.mxu0 %v4074_v1 }
0x10cc   : > { %3708 = vmatpush3.msra.mxu1 %v3046_v39  ;;  %3323 = vmatpush1.msra.mxu0 %v3078_v42 }
0x10cd   : > { %3709 = vmatprep.subr.mxu1 %v3061_v43  ;;  %3324 = vmatprep.subr.mxu0 %v4074_v1 }
0x10ce   : > { %3710 = vmatpush3.msra.mxu1 %v3045_v44  ;;  %3325 = vmatpush1.msra.mxu0 %v3077_v45 }
0x10cf   : > { %3711 = vmatprep.subr.mxu1 %v3060_v23  ;;  %3326 = vmatprep.subr.mxu0 %v4074_v1 }
0x10d0   : > { %3712 = vmatpush3.msra.mxu1 %v3044_v46  ;;  %3327 = vmatpush1.msra.mxu0 %v3076_v12 }
0x10d1   : > { %3713 = vmatprep.subr.mxu1 %v3059_v26  ;;  %3328 = vmatprep.subr.mxu0 %v4074_v1 }
0x10d2   : > { %3714 = vmatpush3.msra.mxu1 %v3043_v41  ;;  %3329 = vmatpush1.msra.mxu0 %v3075_v47 }
0x10d3   : > { %3715 = vmatprep.subr.mxu1 %v3058_v48  ;;  %3330 = vmatprep.subr.mxu0 %v4074_v1 }
0x10d4   : > { %3716 = vmatpush3.msra.mxu1 %v3042_v49  ;;  %3331 = vmatpush1.msra.mxu0 %v3074_v50 }
0x10d5   : > { %3717 = vmatprep.subr.mxu1 %v3057_v51  ;;  %3332 = vmatprep.subr.mxu0 %v4074_v1 }
0x10d6   : > { %3718 = vmatpush3.msra.mxu1 %v3041_v52  ;;  %3333 = vmatpush1.msra.mxu0 %v3073_v53 }
0x10d7   : > { %3719 = vmatprep.subr.mxu1 %v3056_v33  ;;  %3334 = vmatprep.subr.mxu0 %v4074_v1 }
0x10d8   : > { %3720 = vmatpush3.msra.mxu1 %v3040_v21  ;;  %3335 = vmatpush1.msra.mxu0 %v3072_v27 }
0x10d9   : > { %3721 = vmatprep.subr.mxu1 %v3055_v18  ;;  %3336 = vmatprep.subr.mxu0 %v4074_v1 }
0x10da   : > { %3722 = vmatpush3.msra.mxu1 %v3039_v56  ;;  %3337 = vmatpush1.msra.mxu0 %v3071_v58 }
0x10db   : > { %3723 = vmatprep.subr.mxu1 %v3054_v59  ;;  %3338 = vmatprep.subr.mxu0 %v4074_v1 }
0x10dc   : > { %3724 = vmatpush3.msra.mxu1 %v3038_v60  ;;  %3339 = vmatpush1.msra.mxu0 %v3070_v61 }
0x10dd   : > { %3725 = vmatprep.subr.mxu1 %v3053_v62  ;;  %3340 = vmatprep.subr.mxu0 %v4074_v1 }
0x10de   : > { %3726 = vmatpush3.msra.mxu1 %v3037_v0  ;;  %3341 = vmatpush1.msra.mxu0 %v3069_v2 }
0x10df   : > { %3727 = vmatprep.subr.mxu1 %v3052_v3  ;;  %3342 = vmatprep.subr.mxu0 %v4074_v1 }
0x10e0   : > { %3728 = vmatpush3.msra.mxu1 %v3036_v4  ;;  %3343 = vmatpush1.msra.mxu0 %v3068_v5 }
0x10e1   : > { %3307 = vmatmul.mubr.f32.vlgmr.msra.gmra.mxu1 %v2897_v6  ;;  %3350 = vmatprep.subr.mxu0 %v4074_v1 }
0x10e2   : > { %3351 = vmatpush2.msra.mxu0 %v3096_v7 }
0x10e3   : > { %3352 = vmatprep.subr.mxu0 %v4074_v1 }
0x10e4   : > { %3353 = vmatpush2.msra.mxu0 %v3095_v8 }
0x10e5   : > { %3354 = vmatprep.subr.mxu0 %v4074_v1 }
0x10e6   : > { %3355 = vmatpush2.msra.mxu0 %v3094_v9 }
0x10e7   : > { %3356 = vmatprep.subr.mxu0 %v4074_v1 }
0x10e8   : > { %3357 = vmatpush2.msra.mxu0 %v3093_v10 }
0x10e9   : > { %3358 = vmatprep.subr.mxu0 %v4074_v1 }
0x10ea   : > { %3359 = vmatpush2.msra.mxu0 %v3092_v11 }
0x10eb   : > { %3360 = vmatprep.subr.mxu0 %v4074_v1 }
0x10ec   : > { %3361 = vmatpush2.msra.mxu0 %v3091_v13 }
0x10ed   : > { %3362 = vmatprep.subr.mxu0 %v4074_v1 }
0x10ee   : > { %3363 = vmatpush2.msra.mxu0 %v3090_v14 }
0x10ef   : > { %3364 = vmatprep.subr.mxu0 %v4074_v1 }
0x10f0   : > { %3365 = vmatpush2.msra.mxu0 %v3089_v20 }
0x10f1   : > { %3366 = vmatprep.subr.mxu0 %v4074_v1 }
0x10f2   : > { %3367 = vmatpush2.msra.mxu0 %v3088_v22 }
0x10f3   : > { %3368 = vmatprep.subr.mxu0 %v4074_v1 }
0x10f4   : > { %3369 = vmatpush2.msra.mxu0 %v3087_v25 }
0x10f5   : > { %3370 = vmatprep.subr.mxu0 %v4074_v1 }
0x10f6   : > { %3371 = vmatpush2.msra.mxu0 %v3086_v28 }
0x10f7   : > { %3372 = vmatprep.subr.mxu0 %v4074_v1 }
0x10f8   : > { %3373 = vmatpush2.msra.mxu0 %v3085_v15 }
0x10f9   : > { %3374 = vmatprep.subr.mxu0 %v4074_v1 }
0x10fa   : > { %3375 = vmatpush2.msra.mxu0 %v3084_v31 }
0x10fb   : > { %3377 = vmatmul.mubr.f32.vlgmr.msra.gmra.mxu0 %v2968_v32 }
0x1180   : > { %v3659_v57 = vpop.f32.mrf.mxu1  ;;  %v3694_v35 = vpop.f32.mrf.mxu0 }
0x1182   : > { %v3660_v34 = vpop.f32.mrf.mxu1  ;;  %v3695_v16 = vpop.f32.mrf.mxu0 }
0x1183   : > { %v3661_v37 = vadd.f32 %v3660_v34, %v3659_v57  ;;  %v3696_v39 = vadd.f32 %v3695_v16, %v3694_v35 }
0x1185   : > { %v3169_v19 = vadd.f32 %v3661_v37, %v3097_v38 }
0x1187   : > { %v3239_v30 = vadd.f32 %v3696_v39, %v3169_v19 }
0x11a1   : > { %v3729_v36 = vpop.f32.mrf.mxu1 }
0x11a3   : > { %v3730_v17 = vpop.f32.mrf.mxu1 }
0x11a4   : > { %v3731_v42 = vadd.f32 %v3730_v17, %v3729_v36 }
0x11a6   : > { %v3309_v43 = vadd.f32 %v3731_v42, %v3239_v30 }
0x11bb   : > { %v3378_v1 = vpop.f32.mrf.mxu0 }
0x11bc   : > { %v3379_v44 = vadd.f32 %v3378_v1, %v3309_v43 }
0x11bd   : > { %v3380_v45 = vpop.f32.mrf.mxu0 }
0x11be   : > { %v3385_v23 = vrot.slane %v3379_v44, %v2647_v55 }
0x11c0   : > { %3386 = vst [vmem:[%s681_s25] sm:$0xff] %v3385_v23 }
0x11c1 PF: > { %s32_s3 = sadd.s32 1, %s4072_s3  }
0x11c2   : > { %p29_p4 = scmp.ge.s32.totalorder %s32_s3, 4  }
0x11c4   :  { %31 = sbr.rel (!%p29_p4) target bundleno = 8 (0x8), region = 138 }

</bundles_post_ra>
